<compile_context>
chip_gen: v7x
topology: tpu7x:2x2x1
jax: 0.10.0
libtpu: 0.0.40
codegen_flags: <defaults>
</compile_context>

<pallas_src>
import math
import functools

import jax
import jax.numpy as jnp
from jax.experimental import pallas as pl
from jax.experimental.pallas import tpu as pltpu


def _siren_kernel(num_layers, sin_bf16, x_ref, *refs):
    # refs = (w_0, b_0, w_1, b_1, ..., w_last, b_last, out_ref)
    # Activations are (features, TM): batch on the lane axis.
    out_ref = refs[-1]
    param_refs = refs[:-1]

    h = x_ref[...]                                      # (dim_in, TM) f32
    for i in range(num_layers):
        w = param_refs[2 * i][...]                      # (d_out, d_in), w0 folded in
        b = param_refs[2 * i + 1][...]                  # (d_out, 1) lane-broadcast
        if h.dtype != w.dtype:
            h = h.astype(w.dtype)
        pre = jnp.dot(w, h, preferred_element_type=jnp.float32) + b
        if sin_bf16 and i > 0:
            # bf16 sin: the range-reduction + polynomial is the binding VALU
            # work; bf16 packs 2x elements per vreg on v6e/v7x. Layer 0 stays
            # f32 because w0_initial=30 makes its pre-activation large and
            # bf16 rounding of the sin argument there is not acceptable.
            h = jnp.sin(pre.astype(jnp.bfloat16))
        else:
            h = jnp.sin(pre)
    w = param_refs[2 * num_layers][...]
    b = param_refs[2 * num_layers + 1][...]
    if h.dtype != w.dtype:
        h = h.astype(w.dtype)
    out = jnp.dot(w, h, preferred_element_type=jnp.float32) + b
    out_ref[...] = out.astype(out_ref.dtype)
    # Note: in-kernel column sub-chunking (to cut vld/vst traffic) is left out
    # on purpose -- at these shapes the VALU sin is the binding slot and the
    # loads/stores hide under it (per review: only chunk if a bundle dump
    # shows ld/st slot_util > ~50% or spills on the critical path).


def _sin_bf16_default():
    """Enable the bf16-sin path only on bf16-native VALUs (v6e / v7x)."""
    try:
        kind = jax.devices()[0].device_kind.lower()
    except Exception:
        return False
    return ("v6" in kind) or ("v7" in kind)


def _choose_tm(n, tm, *, min_steps=8, tm_cap=8192):
    """Batch-tile (lane) width: a multiple of 128, capped so the 1-D grid keeps
    >= min_steps steps when n allows (v7x: both TensorCores get several tiles;
    all gens: the BlockSpec pipeline can overlap the x/out DMAs with compute),
    and <= tm_cap so the in-kernel (dim_hidden, TM) f32 temporaries stay well
    clear of v7x's 64 MiB VMEM."""
    tm = min(int(tm), int(tm_cap), 128 * pl.cdiv(n, 128 * min_steps))
    return 128 * pl.cdiv(max(tm, 128), 128)


def siren_net_forward_t(x_t, weights, biases, w0s, *, tm=8192, sin_bf16=None,
                        matmul_bf16=None):
    """Transposed entry point (preferred: no wrapper transpose round trips).

    x_t: (dim_in, N) f32.  Returns (dim_out, N) f32.
    weights[i]: (dim_out_i, dim_in_i) (PyTorch layout). biases[i]: (dim_out_i,).
    w0s: per-hidden-layer w0 (len = num_layers).
    """
    num_layers = len(weights) - 1
    dim_in, n = x_t.shape
    dim_out = weights[-1].shape[0]
    dim_hidden = weights[0].shape[0]

    if sin_bf16 is None:
        sin_bf16 = _sin_bf16_default()
    if matmul_bf16 is None:
        # At small dim_hidden the MXU has large slack (K=32 fills a fraction of
        # the systolic array); bf16 dot operands only pay off once the kernel
        # flips to MXU-bound at large dim_hidden.
        matmul_bf16 = dim_hidden >= 256

    tm = _choose_tm(n, tm)
    n_pad = tm * pl.cdiv(n, tm)
    grid = (n_pad // tm,)

    x_p = jnp.asarray(x_t, jnp.float32)
    if n_pad != n:
        x_p = jnp.pad(x_p, ((0, 0), (0, n_pad - n)))

    # Fold w0 into hidden weights/biases; biases shaped (d_out, 1) so they
    # broadcast across the lane (batch) axis.
    params = []
    for i, (w, b) in enumerate(zip(weights, biases)):
        scale = float(w0s[i]) if i < num_layers else 1.0
        w = scale * jnp.asarray(w, jnp.float32)
        if matmul_bf16 and i >= 1:   # layer 0 (raw coordinates) stays f32
            w = w.astype(jnp.bfloat16)
        params.append(w)
        params.append(scale * jnp.asarray(b, jnp.float32).reshape(-1, 1))

    in_specs = [pl.BlockSpec((dim_in, tm), lambda i: (0, i))]
    for p in params:
        # Whole-array block, constant index -> fetched once, VMEM-resident
        # across all grid steps. (Default-arg binding avoids the late-binding
        # closure pitfall.)
        in_specs.append(pl.BlockSpec(p.shape, lambda i, _nd=p.ndim: (0,) * _nd))
    out_specs = pl.BlockSpec((dim_out, tm), lambda i: (0, i))

    dims = [dim_in] + [w.shape[0] for w in weights]
    cost = pl.CostEstimate(
        flops=2 * n_pad * sum(a * b for a, b in zip(dims[:-1], dims[1:])),
        transcendentals=n_pad * num_layers * dim_hidden,
        bytes_accessed=4 * n_pad * (dim_in + dim_out)
                       + sum(int(p.size) * p.dtype.itemsize for p in params),
    )

    out_t = pl.pallas_call(
        functools.partial(_siren_kernel, num_layers, bool(sin_bf16)),
        out_shape=jax.ShapeDtypeStruct((dim_out, n_pad), jnp.float32),
        grid=grid,
        in_specs=in_specs,
        out_specs=out_specs,
        compiler_params=pltpu.CompilerParams(
            dimension_semantics=("parallel",)),
        cost_estimate=cost,
    )(x_p, *params)

    return out_t[:, :n]


def siren_net_forward(x, weights, biases, w0s, **kwargs):
    """Row-major convenience wrapper: x (N, dim_in) -> (N, dim_out).

    Prefer siren_net_forward_t when the surrounding graph can produce/consume
    the (features, N) layout: each transpose here is a separate XLA op that
    re-reads and re-writes the full array in HBM."""
    out_t = siren_net_forward_t(jnp.asarray(x, jnp.float32).T,
                                weights, biases, w0s, **kwargs)
    return out_t.T


def init_siren_params(key, dim_in, dim_hidden, dim_out, num_layers,
                      w0=1.0, w0_initial=30.0, c=6.0):
    """Deterministic SIREN init (matches Siren.init_)."""
    weights, biases, w0s = [], [], []
    layer_in = dim_in
    for ind in range(num_layers):
        is_first = ind == 0
        layer_w0 = w0_initial if is_first else w0
        w_std = (1.0 / layer_in) if is_first else math.sqrt(c / layer_in) / layer_w0
        key, kw, kb = jax.random.split(key, 3)
        weights.append(jax.random.uniform(kw, (dim_hidden, layer_in),
                                          minval=-w_std, maxval=w_std, dtype=jnp.float32))
        biases.append(jax.random.uniform(kb, (dim_hidden,),
                                         minval=-w_std, maxval=w_std, dtype=jnp.float32))
        w0s.append(layer_w0)
        layer_in = dim_hidden
    # last layer (activation = Identity, is_first=False, w0=w0)
    w_std = math.sqrt(c / dim_hidden) / w0
    key, kw, kb = jax.random.split(key, 3)
    weights.append(jax.random.uniform(kw, (dim_out, dim_hidden),
                                      minval=-w_std, maxval=w_std, dtype=jnp.float32))
    biases.append(jax.random.uniform(kb, (dim_out,),
                                     minval=-w_std, maxval=w_std, dtype=jnp.float32))
    return weights, biases, w0s


def siren_net_ref(x, weights, biases, w0s):
    """Pure-JAX reference (mirrors the PyTorch forward)."""
    h = x
    num_layers = len(weights) - 1
    for i in range(num_layers):
        h = jnp.sin(w0s[i] * (h @ weights[i].T + biases[i]))
    return h @ weights[-1].T + biases[-1]


if __name__ == "__main__":
    key = jax.random.PRNGKey(0)

    # Small shapes consistent with a location encoder: 2-D coords -> 16-D emb.
    batch, dim_in, dim_hidden, dim_out, num_layers = 256, 2, 32, 16, 3

    key, kx = jax.random.split(key)
    x = jax.random.uniform(kx, (batch, dim_in), minval=-1.0, maxval=1.0,
                           dtype=jnp.float32)

    weights, biases, w0s = init_siren_params(
        key, dim_in, dim_hidden, dim_out, num_layers, w0=1.0, w0_initial=30.0)

    ref = siren_net_ref(x, weights, biases, w0s)

    # f32 activation path (all generations): strict check. tm=128 so the demo
    # exercises a multi-step pipelined grid even at this small batch.
    out = siren_net_forward(x, weights, biases, w0s, tm=128, sin_bf16=False)
    out = jax.block_until_ready(out)
    assert out.shape == (batch, dim_out)
    assert jnp.allclose(out, ref, atol=1e-4, rtol=1e-4), "f32 mismatch vs JAX reference"

    # bf16-sin path (exercised only where the VALUs are bf16-native: v6e/v7x).
    # Hidden activations are bounded in [-1, 1] and layer 0 stays f32, so the
    # error stays small; validate with a correspondingly looser tolerance.
    if _sin_bf16_default():
        out_bf16 = jax.block_until_ready(
            siren_net_forward(x, weights, biases, w0s, tm=128, sin_bf16=True))
        assert out_bf16.shape == (batch, dim_out)
        assert jnp.allclose(out_bf16, ref, atol=1e-1, rtol=1e-1), \
            "bf16-sin mismatch vs JAX reference"

    print("KERNEL_OK")
</pallas_src>

<mosaic_0001>
module attributes {stable_mosaic.version = 11 : i64} {
  func.func @_siren_kernel(%arg0: i32, %arg1: memref<2x128xf32, #tpu.memory_space<vmem>>, %arg2: memref<32x2xf32, #tpu.memory_space<vmem>>, %arg3: memref<32x1xf32, #tpu.memory_space<vmem>>, %arg4: memref<32x32xf32, #tpu.memory_space<vmem>>, %arg5: memref<32x1xf32, #tpu.memory_space<vmem>>, %arg6: memref<32x32xf32, #tpu.memory_space<vmem>>, %arg7: memref<32x1xf32, #tpu.memory_space<vmem>>, %arg8: memref<16x32xf32, #tpu.memory_space<vmem>>, %arg9: memref<16x1xf32, #tpu.memory_space<vmem>>, %arg10: memref<16x128xf32, #tpu.memory_space<vmem>>) attributes {dimension_semantics = [#tpu.dimension_semantics<parallel>], iteration_bounds = array<i64: 2>, scalar_prefetch = 0 : i64, scratch_operands = 0 : i64, tpu.core_type = #tpu.core_type<tc>, window_params = [{transform_indices = @transform_0, window_bounds = array<i64: 2, 128>}, {pipeline_mode = #tpu.pipeline_mode<synchronous>, transform_indices = @transform_1, window_bounds = array<i64: 32, 2>}, {pipeline_mode = #tpu.pipeline_mode<synchronous>, transform_indices = @transform_2, window_bounds = array<i64: 32, 1>}, {pipeline_mode = #tpu.pipeline_mode<synchronous>, transform_indices = @transform_3, window_bounds = array<i64: 32, 32>}, {pipeline_mode = #tpu.pipeline_mode<synchronous>, transform_indices = @transform_4, window_bounds = array<i64: 32, 1>}, {pipeline_mode = #tpu.pipeline_mode<synchronous>, transform_indices = @transform_5, window_bounds = array<i64: 32, 32>}, {pipeline_mode = #tpu.pipeline_mode<synchronous>, transform_indices = @transform_6, window_bounds = array<i64: 32, 1>}, {pipeline_mode = #tpu.pipeline_mode<synchronous>, transform_indices = @transform_7, window_bounds = array<i64: 16, 32>}, {pipeline_mode = #tpu.pipeline_mode<synchronous>, transform_indices = @transform_8, window_bounds = array<i64: 16, 1>}, {transform_indices = @transform_9, window_bounds = array<i64: 16, 128>}]} {
    %c0 = arith.constant 0 : index
    %c0_0 = arith.constant 0 : index
    %0 = vector.load %arg1[%c0, %c0_0] : memref<2x128xf32, #tpu.memory_space<vmem>>, vector<2x128xf32>
    %c0_1 = arith.constant 0 : index
    %c0_2 = arith.constant 0 : index
    %1 = vector.load %arg2[%c0_1, %c0_2] : memref<32x2xf32, #tpu.memory_space<vmem>>, vector<32x2xf32>
    %c0_3 = arith.constant 0 : index
    %c0_4 = arith.constant 0 : index
    %2 = vector.load %arg3[%c0_3, %c0_4] : memref<32x1xf32, #tpu.memory_space<vmem>>, vector<32x1xf32>
    %cst = arith.constant dense<0.000000e+00> : vector<32x128xf32>
    %3 = tpu.matmul %1, %0, %cst {dimension_numbers = #tpu.dot_dimension_numbers<[1], [0], [0], [1], [0, 0, 1, 1], [], []>} : vector<32x2xf32>, vector<2x128xf32>, vector<32x128xf32> -> vector<32x128xf32>
    %4 = vector.broadcast %2 : vector<32x1xf32> to vector<32x128xf32>
    %5 = arith.addf %3, %4 : vector<32x128xf32>
    %6 = math.sin %5 : vector<32x128xf32>
    %c0_5 = arith.constant 0 : index
    %c0_6 = arith.constant 0 : index
    %7 = vector.load %arg4[%c0_5, %c0_6] : memref<32x32xf32, #tpu.memory_space<vmem>>, vector<32x32xf32>
    %c0_7 = arith.constant 0 : index
    %c0_8 = arith.constant 0 : index
    %8 = vector.load %arg5[%c0_7, %c0_8] : memref<32x1xf32, #tpu.memory_space<vmem>>, vector<32x1xf32>
    %cst_9 = arith.constant dense<0.000000e+00> : vector<32x128xf32>
    %9 = tpu.matmul %7, %6, %cst_9 {dimension_numbers = #tpu.dot_dimension_numbers<[1], [0], [0], [1], [0, 0, 1, 1], [], []>} : vector<32x32xf32>, vector<32x128xf32>, vector<32x128xf32> -> vector<32x128xf32>
    %10 = vector.broadcast %8 : vector<32x1xf32> to vector<32x128xf32>
    %11 = arith.addf %9, %10 : vector<32x128xf32>
    %12 = math.sin %11 : vector<32x128xf32>
    %c0_10 = arith.constant 0 : index
    %c0_11 = arith.constant 0 : index
    %13 = vector.load %arg6[%c0_10, %c0_11] : memref<32x32xf32, #tpu.memory_space<vmem>>, vector<32x32xf32>
    %c0_12 = arith.constant 0 : index
    %c0_13 = arith.constant 0 : index
    %14 = vector.load %arg7[%c0_12, %c0_13] : memref<32x1xf32, #tpu.memory_space<vmem>>, vector<32x1xf32>
    %cst_14 = arith.constant dense<0.000000e+00> : vector<32x128xf32>
    %15 = tpu.matmul %13, %12, %cst_14 {dimension_numbers = #tpu.dot_dimension_numbers<[1], [0], [0], [1], [0, 0, 1, 1], [], []>} : vector<32x32xf32>, vector<32x128xf32>, vector<32x128xf32> -> vector<32x128xf32>
    %16 = vector.broadcast %14 : vector<32x1xf32> to vector<32x128xf32>
    %17 = arith.addf %15, %16 : vector<32x128xf32>
    %18 = math.sin %17 : vector<32x128xf32>
    %c0_15 = arith.constant 0 : index
    %c0_16 = arith.constant 0 : index
    %19 = vector.load %arg8[%c0_15, %c0_16] : memref<16x32xf32, #tpu.memory_space<vmem>>, vector<16x32xf32>
    %c0_17 = arith.constant 0 : index
    %c0_18 = arith.constant 0 : index
    %20 = vector.load %arg9[%c0_17, %c0_18] : memref<16x1xf32, #tpu.memory_space<vmem>>, vector<16x1xf32>
    %cst_19 = arith.constant dense<0.000000e+00> : vector<16x128xf32>
    %21 = tpu.matmul %19, %18, %cst_19 {dimension_numbers = #tpu.dot_dimension_numbers<[1], [0], [0], [1], [0, 0, 1, 1], [], []>} : vector<16x32xf32>, vector<32x128xf32>, vector<16x128xf32> -> vector<16x128xf32>
    %22 = vector.broadcast %20 : vector<16x1xf32> to vector<16x128xf32>
    %23 = arith.addf %21, %22 : vector<16x128xf32>
    %c0_20 = arith.constant 0 : index
    %c0_21 = arith.constant 0 : index
    %24 = vector.load %arg10[%c0_20, %c0_21] : memref<16x128xf32, #tpu.memory_space<vmem>>, vector<16x128xf32>
    tpu.vector_store %arg10[%c0_20, %c0_21], %23 {strides = array<i32>} : memref<16x128xf32, #tpu.memory_space<vmem>>, vector<16x128xf32>,
    return
  }
  func.func @transform_0(%arg0: i32) -> (i32, i32) {
    %c0_i32 = arith.constant 0 : i32
    %c0_i32_0 = arith.constant 0 : i32
    return %c0_i32, %arg0 : i32, i32
  }
  func.func @transform_1(%arg0: i32) -> (i32, i32) {
    %c0_i32 = arith.constant 0 : i32
    %c0_i32_0 = arith.constant 0 : i32
    %c0_i32_1 = arith.constant 0 : i32
    return %c0_i32, %c0_i32_0 : i32, i32
  }
  func.func @transform_2(%arg0: i32) -> (i32, i32) {
    %c0_i32 = arith.constant 0 : i32
    %c0_i32_0 = arith.constant 0 : i32
    %c0_i32_1 = arith.constant 0 : i32
    return %c0_i32, %c0_i32_0 : i32, i32
  }
  func.func @transform_3(%arg0: i32) -> (i32, i32) {
    %c0_i32 = arith.constant 0 : i32
    %c0_i32_0 = arith.constant 0 : i32
    %c0_i32_1 = arith.constant 0 : i32
    return %c0_i32, %c0_i32_0 : i32, i32
  }
  func.func @transform_4(%arg0: i32) -> (i32, i32) {
    %c0_i32 = arith.constant 0 : i32
    %c0_i32_0 = arith.constant 0 : i32
    %c0_i32_1 = arith.constant 0 : i32
    return %c0_i32, %c0_i32_0 : i32, i32
  }
  func.func @transform_5(%arg0: i32) -> (i32, i32) {
    %c0_i32 = arith.constant 0 : i32
    %c0_i32_0 = arith.constant 0 : i32
    %c0_i32_1 = arith.constant 0 : i32
    return %c0_i32, %c0_i32_0 : i32, i32
  }
  func.func @transform_6(%arg0: i32) -> (i32, i32) {
    %c0_i32 = arith.constant 0 : i32
    %c0_i32_0 = arith.constant 0 : i32
    %c0_i32_1 = arith.constant 0 : i32
    return %c0_i32, %c0_i32_0 : i32, i32
  }
  func.func @transform_7(%arg0: i32) -> (i32, i32) {
    %c0_i32 = arith.constant 0 : i32
    %c0_i32_0 = arith.constant 0 : i32
    %c0_i32_1 = arith.constant 0 : i32
    return %c0_i32, %c0_i32_0 : i32, i32
  }
  func.func @transform_8(%arg0: i32) -> (i32, i32) {
    %c0_i32 = arith.constant 0 : i32
    %c0_i32_0 = arith.constant 0 : i32
    %c0_i32_1 = arith.constant 0 : i32
    return %c0_i32, %c0_i32_0 : i32, i32
  }
  func.func @transform_9(%arg0: i32) -> (i32, i32) {
    %c0_i32 = arith.constant 0 : i32
    %c0_i32_0 = arith.constant 0 : i32
    return %c0_i32, %arg0 : i32, i32
  }
}

</mosaic_0001>

<bundles_post_ra>
// kernel: tpu_custom_call.1
= control target key start
LH: loop header
LB: loop body
LE: loop exit
PB: predicated region body
PF: predicated region fallthrough
CT: control target
= control target key end

     0   :  { %14 = vsyncpa [#allocation3], 0  ;;  %s3645_s0 = inlined_call_operand.vmem [shape: f32[2,256], index: 0, kind: input, shape index: {}]   ;;  %s3646_s1 = inlined_call_operand.vmem [shape: f32[32,2], index: 1, kind: input, shape index: {}]   ;;  %s3647_s2 = inlined_call_operand.vmem [shape: f32[32,1], index: 2, kind: input, shape index: {}]   ;;  %s3648_s3 = inlined_call_operand.vmem [shape: f32[32,32], index: 3, kind: input, shape index: {}]   ;;  %s3649_s4 = inlined_call_operand.vmem [shape: f32[32,1], index: 4, kind: input, shape index: {}]   ;;  %s3650_s5 = inlined_call_operand.vmem [shape: f32[32,32], index: 5, kind: input, shape index: {}]   ;;  %s3651_s6 = inlined_call_operand.vmem [shape: f32[32,1], index: 6, kind: input, shape index: {}]   ;;  %s3652_s7 = inlined_call_operand.vmem [shape: f32[16,32], index: 7, kind: input, shape index: {}]   ;;  %s3653_s8 = inlined_call_operand.vmem [shape: f32[16,1], index: 8, kind: input, shape index: {}]   ;;  %s3654_s9 = inlined_call_operand.hbm [shape: f32[16,256], index: 9, kind: output, shape index: {}]  }
   0x1   :  { %16 = vsyncpa [#allocation3 + $0x1], 0  ;;  %s2573_s30 = smov 0   ;;  %s2575_s10 = smov 0  }
   0x2   :  { %s2577_s11 = smov 0   ;;  %s2579_s12 = smov 0  }
   0x3 LB: > { %s2594_s13 = sadd.s32 4294967295, %s2510_s12   ;;  %s2130_s14 = sadd.s32 4294967294, %s2510_s12   ;;  %s2510_s12 = sphi %s2579_s12, %s3678_s12   ;;  %s2506_s11 = sphi %s2577_s11, %s3677_s11   ;;  %s2502_s10 = sphi %s2575_s10, %s3676_s10   ;;  %s2498_s30 = sphi %s2573_s30, %s3675_s30  }
   0x4   : > { %s2598_s15 = sadd.s32 1, %s2510_s12   ;;  %s223_s16 = sadd.s32 1, %s2506_s11 }
   0x5   : > { %s220_s17 = ssub.s32 %s2510_s12, %s2598_s15  ;;  %p233_p0 = scmp.ne.s32.totalorder %s2506_s11, %s2502_s10 }
   0x6   : > { %p221_p1 = scmp.eq.s32.totalorder %s220_s17, 0  ;;  %p234_p2 = scmp.eq.s32.totalorder %s2594_s13, 1 }
   0x7   : > { %p239_p3 = scmp.ne.s32.totalorder %s2502_s10, %s2498_s30  ;;  %p240_p4 = scmp.eq.s32.totalorder %s2130_s14, 1 }
   0x8   : > { %s2609_s18 = scalar_select %p221_p1, %s2506_s11, %s223_s16  }
   0x9   : > { %p2611_p5 = por %p234_p2, %p233_p0  ;;  %p2615_p6 = por %p240_p4, %p239_p3 }
   0xa   : > { %p2133_p7 = scmp.ge.s32.totalorder %s2510_s12, 1  ;;  %p289_p8 = scmp.lt.s32.totalorder %s2510_s12, 3 }
   0xc   : > { %p290_p9 = pnand %p2133_p7, %p289_p8 }
   0xd   : > { %p324_p10 = scmp.lt.s32.totalorder (!%p290_p9), %s2594_s13, 1  ;;  %v329_v0 = vld [vmem:[%s3646_s1] sm:$0xff] (!%p290_p9)  ;;  %vm357_vm0 = vcmask (!%p290_p9), 15360   ;;  %v335_v2 = vld [vmem:[%s3647_s2 + $0x10] sm:$0xff] (!%p290_p9)  ;;  %v2512_v3 = vmov (!%p290_p9), 0   ;;  %vm370_vm1 = vcmask (!%p290_p9), 1041408  }
   0xe   : > { %293 = sbr.rel (%p290_p9) target bundleno = 1311 (0x51f), region = 56  ;;  %2232 = vmatprep.mubr.msk.f32.mxu0 (!%p290_p9), %vm357_vm0, %v329_v0  ;;  %v333_v1 = vld [vmem:[%s3647_s2] sm:$0xff] (!%p290_p9)  ;;  %2398 = vset.pattern.permute.xlu0 (!%p290_p9), %v2512_v3  ;;  %v334_v4 = vld [vmem:[%s3647_s2 + $0x8] sm:$0xff] (!%p290_p9)  ;;  %v336_v5 = vld [vmem:[%s3647_s2 + $0x18] sm:$0xff] (!%p290_p9)  ;;  %v2513_v63 = vmov (!%p290_p9), 683565275  }
   0xf   : > { %2399 = vset.pattern.permute.xlu1 (!%p290_p9), %v2512_v3  ;;  %339 = vperm.xlu0 (!%p290_p9), %2398, %v333_v1   ;;  %v330_v7 = vld [vmem:[%s3646_s1 + $0x8] sm:$0xff] (!%p290_p9)  ;;  %v331_v8 = vld [vmem:[%s3646_s1 + $0x10] sm:$0xff] (!%p290_p9)  ;;  %v879_v9 = vld [vmem:[%s3649_s4] sm:$0xff] (!%p290_p9)  ;;  %v2514_v1 = vmov (!%p290_p9), 2475754826   ;;  %vm903_vm14 = vcmask (!%p290_p9), 261120  }
  0x10   : > { %349 = vperm.xlu1 (!%p290_p9), %2399, %v335_v2   ;;  %v880_v10 = vld [vmem:[%s3649_s4 + $0x8] sm:$0xff] (!%p290_p9)  ;;  %v332_v11 = vld [vmem:[%s3646_s1 + $0x18] sm:$0xff] (!%p290_p9)  ;;  %v881_v12 = vld [vmem:[%s3649_s4 + $0x10] sm:$0xff] (!%p290_p9)  ;;  %s321_s22 = sand.u32 (!%p290_p9), 1, %s2502_s10   ;;  %s2200_s26 = sshll.u32 (!%p290_p9), %s2594_s13, 7 }
  0x11   : > { %v882_v13 = vld [vmem:[%s3649_s4 + $0x18] sm:$0xff] (!%p290_p9)  ;;  %v1421_v14 = vld [vmem:[%s3651_s6] sm:$0xff] (!%p290_p9)  ;;  %v1422_v15 = vld [vmem:[%s3651_s6 + $0x8] sm:$0xff] (!%p290_p9)  ;;  %s2134_s23 = sshll.u32 (!%p290_p9), %s321_s22, 4  ;;  %s3602_s14 = scalar_lea.hbm (!%p290_p9), %s3654_s9, %s2200_s26 }
  0x12   : > { %v1423_v16 = vld [vmem:[%s3651_s6 + $0x10] sm:$0xff] (!%p290_p9)  ;;  %v1424_v17 = vld [vmem:[%s3651_s6 + $0x18] sm:$0xff] (!%p290_p9)  ;;  %v1960_v18 = vld [vmem:[%s3653_s8] sm:$0xff] (!%p290_p9)  ;;  %s323_s24 = scalar_lea.vmem (!%p290_p9), [#allocation2], %s2134_s23  ;;  %s2519_s16 = smov (!%p290_p9), [#allocation2]  }
  0x13   : > { %344 = vperm.xlu0 (!%p290_p9), %2398, %v334_v4   ;;  %v1961_v19 = vld [vmem:[%s3653_s8 + $0x8] sm:$0xff] (!%p290_p9)  ;;  %v2515_v4 = vmov (!%p290_p9), 2131351028   ;;  %s2068_s25 = sshll.u32 (!%p290_p9), %s323_s24, 4  ;;  %s2452_s17 = sshll.u32 (!%p290_p9), %s2519_s16, 4  ;;  %s3597_s25 = int_to_ptr.vmem [resolvable:$true] %s2068_s25  ;;  %s2453_s17 = int_to_ptr.vmem [resolvable:$false] %s2452_s17 }
  0x14   : > { %354 = vperm.xlu1 (!%p290_p9), %2399, %v336_v5   ;;  %p2455_p0 = scmp.lt.s32.totalorder (!%p290_p9), %s3597_s25, %s2453_s17 }
  0x15   : > { %s325_s27 = scalar_select %p324_p10, %s2594_s13, 1 }
  0x16   : > { %s2448_s13 = scalar_lea.vmem %s3597_s25, 256 }
  0x17   : > { %s2135_s28 = sshll.u32 %s325_s27, 1  ;;  %885 = vperm.xlu0 %2398, %v879_v9   ;;  %p2449_p11 = scmp.ne.s32.totalorder %s3597_s25, %s2448_s13 }
  0x18   : > { %s327_s21 = scalar_lea.vmem %s3645_s0, %s2135_s28  ;;  %890 = vperm.xlu1 %2399, %v880_v10   ;;  %s3604_s28 = scalar_lea.sflag [#allocation3], %s321_s22 }
  0x19   : > { %v328_v6 = vld [vmem:[%s327_s21] sm:$0x3]  ;;  %p2450_p12 = pnand %p2449_p11, %p2611_p5  ;;  %s2454_s21 = scalar_lea.vmem %s2453_s17, 512 }
  0x1a   : > { %2230 = vmatprep.subr.msk.mxu0 %vm370_vm1, %v328_v6  ;;  %p2456_p1 = scmp.lt.s32.totalorder %s2454_s21, %s2448_s13 }
  0x1b   : > { %2231 = vmatpush3.msk.msra.mxu0 %vm370_vm1, %v328_v6  ;;  %895 = vperm.xlu0 %2398, %v881_v12   ;;  %v2516_v6 = vmov 2102212464   ;;  %p2451_p13 = pneg %p2450_p12 }
  0x1c   : > { %2233 = vmatmul.mubr.msk.f32.vlgmr.msra.gmra.mrb[0].mxu0 %vm357_vm0, %v330_v7  ;;  %900 = vperm.xlu1 %2399, %v882_v13   ;;  %p2457_p2 = por %p2456_p1, %p2455_p0 }
  0x1d   : > { %2235 = vmatprep.mubr.msk.f32.mxu0 %vm357_vm0, %v331_v8  ;;  %v2517_v8 = vmov 920167782  }
  0x1e   : > { %p2458_p3 = pnand %p2457_p2, %p2451_p13 }
  0x1f   : > { %1427 = vperm.xlu0 %2398, %v1421_v14  }
  0x20   : > { %2236 = vmatmul.mubr.msk.f32.gmra.mrb[2].mxu0 %vm357_vm0, %v332_v11  ;;  %1432 = vperm.xlu1 %2399, %v1422_v15   ;;  %v2518_v15 = vmov 1326507024  }
  0x23   : > { %1437 = vperm.xlu0 %2398, %v1423_v16  }
  0x24   : > { %1442 = vperm.xlu1 %2399, %v1424_v17  }
  0x27   : > { %1964 = vperm.xlu0 %2398, %v1960_v18  }
  0x28   : > { %1969 = vperm.xlu1 %2399, %v1961_v19  }
  0x8e   : > { %v340_v20 = vpop.permute.xlu0 %339 }
  0x8f   : > { %v350_v21 = vpop.permute.xlu1 %349 }
  0x92   : > { %v345_v22 = vpop.permute.xlu0 %344 }
  0x93   : > { %v355_v29 = vpop.permute.xlu1 %354 }
  0xef   : > { %v2234_v23 = vpop.f32.mrb[0].mxu0 }
  0xf0   : > { %v2684_v24 = vadd.f32 %v2234_v23, %v345_v22  ;;  %v440_v25 = vpop.f32.mrb[1].mxu0 }
  0xf1   : > { %v2686_v26 = vadd.f32 %v440_v25, %v340_v20 }
  0xf2   : > { %v563_v27 = vand.u32 2147483647, %v2684_v24  ;;  %v566_v28 = vand.u32 2139095040, %v2684_v24 }
  0xf3   : > { %v459_v30 = vand.u32 2147483647, %v2686_v26  ;;  %v462_v31 = vand.u32 2139095040, %v2686_v26  ;;  %v2237_v32 = vpop.f32.mrb[2].mxu0 }
  0xf4   : > { %v567_v33 = vshrl.u32 %v566_v28, 23  ;;  %v570_v34 = vand.u32 8388607, %v563_v27  ;;  %v2694_v35 = vadd.f32 %v2237_v32, %v355_v29  ;;  %v450_v36 = vpop.f32.mrb[3].mxu0 }
  0xf5   : > { %v463_v37 = vshrl.u32 %v462_v31, 23  ;;  %v466_v38 = vand.u32 8388607, %v459_v30  ;;  %v2699_v41 = vadd.f32 %v450_v36, %v350_v21 }
  0xf6   : > { %v2145_v39 = vadd.s32 4294967169, %v567_v33  ;;  %v771_v40 = vand.u32 2147483647, %v2694_v35  ;;  %v571_v42 = vor.u32 8388608, %v570_v34  ;;  %v774_v44 = vand.u32 2139095040, %v2694_v35 }
  0xf7   : > { %v2141_v43 = vadd.s32 4294967169, %v463_v37  ;;  %v467_v46 = vor.u32 8388608, %v466_v38  ;;  %v667_v50 = vand.u32 2147483647, %v2699_v41  ;;  %v670_v61 = vand.u32 2139095040, %v2699_v41 }
  0xf8   : > { %v573_v45 = vadd.s32 1, %v2145_v39  ;;  %v775_v48 = vshrl.u32 %v774_v44, 23  ;;  %v2704_v49 = vand.u32 8388607, %v771_v40  ;;  %v2707_v52 = vshll.u32 %v571_v42, 8 }
  0xf9   : > { %v469_v47 = vadd.s32 1, %v2141_v43  ;;  %v2709_v57 = vshll.u32 %v467_v46, 8 }
  0xfa   : > { %vm574_vm2 = vcmp.gt.s32.totalorder %v573_v45, 0  ;;  %v2153_v53 = vadd.s32 4294967169, %v775_v48  ;;  %v779_v60 = vor.u32 8388608, %v2704_v49 }
  0xfb   : > { %v575_v51 = vsel %vm574_vm2, %v573_v45, 0  ;;  %vm470_vm3 = vcmp.gt.s32.totalorder %v469_v47, 0 }
  0xfc   : > { %v576_v54 = vshrl.u32 %v575_v51, 5  ;;  %v577_v55 = vand.u32 31, %v575_v51  ;;  %v471_v56 = vsel %vm470_vm3, %v469_v47, 0  ;;  %v2717_v3 = vadd.s32 1, %v2153_v53 }
  0xfd   : > { %v2711_v58 = vshrl.u32 %v471_v56, 5  ;;  %v473_v59 = vand.u32 31, %v471_v56 }
  0xfe   : > { %v578_v62 = vsub.s32 32, %v577_v55  ;;  %v580_v0 = vshll.u32 %v2513_v63, %v577_v55  ;;  %v583_v2 = vshll.u32 %v2514_v1, %v577_v55  ;;  %v586_v5 = vshll.u32 %v2515_v4, %v577_v55 }
  0xff   : > { %v589_v7 = vshll.u32 %v2516_v6, %v577_v55  ;;  %v592_v9 = vshll.u32 %v2517_v8, %v577_v55  ;;  %vm595_vm4 = vcmp.lt.s32.totalorder %v576_v54, 1  ;;  %vm596_vm5 = vcmp.lt.s32.totalorder %v576_v54, 2 }
 0x100   : > { %v581_v10 = vshrl.u32 %v2514_v1, %v578_v62  ;;  %v584_v11 = vshrl.u32 %v2515_v4, %v578_v62  ;;  %v587_v12 = vshrl.u32 %v2516_v6, %v578_v62  ;;  %v579_v13 = vshrl.u32 %v2513_v63, %v578_v62 }
 0x101   : > { %v590_v14 = vshrl.u32 %v2517_v8, %v578_v62  ;;  %v593_v16 = vshrl.u32 %v2518_v15, %v578_v62  ;;  %vm597_vm6 = vcmp.lt.s32.totalorder %v576_v54, 3  ;;  %v474_v20 = vsub.s32 32, %v473_v59 }
 0x102   : > { %v582_v17 = vor.u32 %v581_v10, %v580_v0  ;;  %v585_v18 = vor.u32 %v584_v11, %v583_v2  ;;  %v588_v19 = vor.u32 %v587_v12, %v586_v5  ;;  %vm598_vm7 = vcmp.lt.s32.totalorder %v576_v54, 4 }
 0x103   : > { %v591_v21 = vor.u32 %v590_v14, %v589_v7  ;;  %v594_v22 = vor.u32 %v593_v16, %v592_v9  ;;  %v476_v23 = vshll.u32 %v2513_v63, %v473_v59  ;;  %v479_v36 = vshll.u32 %v2514_v1, %v473_v59 }
 0x104   : > { %v599_v25 = vsel %vm595_vm4, %v579_v13, %v582_v17  ;;  %v600_v28 = vsel %vm598_vm7, %v588_v19, 2102212464  ;;  %v603_v29 = vsel %vm595_vm4, %v582_v17, %v585_v18  ;;  %v607_v31 = vsel %vm595_vm4, %v585_v18, %v588_v19 }
 0x105   : > { %v601_v32 = vsel %vm597_vm6, %v585_v18, %v600_v28  ;;  %v604_v33 = vsel %vm598_vm7, %v591_v21, 920167782  ;;  %v608_v34 = vsel %vm598_vm7, %v594_v22, 1326507024  ;;  %v475_v39 = vshrl.u32 %v2513_v63, %v474_v20 }
 0x106   : > { %v605_v37 = vsel %vm597_vm6, %v588_v19, %v604_v33  ;;  %v609_v38 = vsel %vm597_vm6, %v591_v21, %v608_v34  ;;  %v477_v42 = vshrl.u32 %v2514_v1, %v474_v20  ;;  %v602_v43 = vsel %vm596_vm5, %v599_v25, %v601_v32 }
 0x107   : > { %v606_v44 = vsel %vm596_vm5, %v603_v29, %v605_v37  ;;  %v610_v45 = vsel %vm596_vm5, %v607_v31, %v609_v38  ;;  %v480_v46 = vshrl.u32 %v2515_v4, %v474_v20  ;;  %v482_v62 = vshll.u32 %v2515_v4, %v473_v59 }
 0x108   : > { %v2743_v47 = vmul.u32.u64.low %v2707_v52, %v610_v45  ;;  %v2744_v48 = vmul.u32.u64.high %v2707_v52, %v610_v45, %v2743_v47  ;;  %v2747_v51 = vmul.u32.u64.low %v2707_v52, %v606_v44  ;;  %v2748_v53 = vmul.u32.u64.high %v2707_v52, %v606_v44, %v2747_v51 }
 0x109   : > { %v478_v55 = vor.u32 %v477_v42, %v476_v23  ;;  %v481_v56 = vor.u32 %v480_v46, %v479_v36  ;;  %v483_v0 = vshrl.u32 %v2516_v6, %v474_v20  ;;  %v618_v54 = vmul.u32 %v2707_v52, %v602_v43 }
 0x10a   : > { %v485_v2 = vshll.u32 %v2516_v6, %v473_v59  ;;  %v486_v5 = vshrl.u32 %v2517_v8, %v474_v20  ;;  %v489_v7 = vshrl.u32 %v2518_v15, %v474_v20  ;;  %v488_v10 = vshll.u32 %v2517_v8, %v473_v59 }
 0x10b   : > { %v484_v9 = vor.u32 %v483_v0, %v482_v62  ;;  %vm491_vm8 = vcmp.lt.s32.totalorder %v2711_v58, 1  ;;  %vm492_vm9 = vcmp.lt.s32.totalorder %v2711_v58, 2  ;;  %vm620_vm10 = vc.u32 %v2744_v48, %v2747_v51 }
 0x10c   : > { %v621_v11 = vadd.s32 1, %v2748_v53  ;;  %v487_v12 = vor.u32 %v486_v5, %v485_v2  ;;  %vm493_vm11 = vcmp.lt.s32.totalorder %v2711_v58, 3  ;;  %v490_v52 = vor.u32 %v489_v7, %v488_v10 }
 0x10d   : > { %vm494_vm12 = vcmp.lt.s32.totalorder %v2711_v58, 4  ;;  %v495_v13 = vsel %vm491_vm8, %v475_v39, %v478_v55  ;;  %v499_v14 = vsel %vm491_vm8, %v478_v55, %v481_v56  ;;  %v503_v18 = vsel %vm491_vm8, %v481_v56, %v484_v9  ;;  %v875_v39 = vld [vmem:[%s3648_s3] sm:$0xff] }
 0x10e   : > { %v622_v16 = vsel %vm620_vm10, %v621_v11, %v2748_v53  ;;  %v496_v59 = vsel %vm494_vm12, %v484_v9, 2102212464  ;;  %v500_v17 = vsel %vm494_vm12, %v487_v12, 920167782  ;;  %v504_v22 = vsel %vm494_vm12, %v490_v52, 1326507024  ;;  %2246 = vmatprep.mubr.msk.f32.mxu1 %vm903_vm14, %v875_v39 }
 0x10f   : > { %v623_v19 = vadd.s32 %v622_v16, %v618_v54  ;;  %v497_v20 = vsel %vm493_vm11, %v481_v56, %v496_v59  ;;  %v501_v21 = vsel %vm493_vm11, %v484_v9, %v500_v17  ;;  %v505_v28 = vsel %vm493_vm11, %v487_v12, %v504_v22 }
 0x110   : > { %v498_v23 = vsel %vm492_vm9, %v495_v13, %v497_v20  ;;  %v502_v25 = vsel %vm492_vm9, %v499_v14, %v501_v21  ;;  %vm782_vm13 = vcmp.gt.s32.totalorder %v2717_v3, 0  ;;  %v506_v31 = vsel %vm492_vm9, %v503_v18, %v505_v28 }
 0x111   : > { %v624_v29 = vadd.s32 536870912, %v623_v19  ;;  %v2774_v32 = vmul.u32.u64.low %v2709_v57, %v502_v25  ;;  %v2775_v33 = vmul.u32.u64.high %v2709_v57, %v502_v25, %v2774_v32  ;;  %v783_v37 = vsel %vm782_vm13, %v2717_v3, 0 }
 0x112   : > { %v2779_v34 = vmul.u32.u64.low %v2709_v57, %v506_v31  ;;  %v2780_v36 = vmul.u32.u64.high %v2709_v57, %v506_v31, %v2779_v34  ;;  %v671_v38 = vshrl.u32 %v670_v61, 23  ;;  %v785_v42 = vand.u32 31, %v783_v37 }
 0x113   : > { %v2788_v58 = vshrl.u32 %v624_v29, 30  ;;  %v514_v43 = vmul.u32 %v2709_v57, %v498_v23  ;;  %v2793_v44 = vshll.u32 %v779_v60, 8  ;;  %v2797_v45 = vand.u32 8388607, %v667_v50 }
 0x114   : > { %v517_v3 = vadd.s32 1, %v2775_v33  ;;  %v784_v46 = vshrl.u32 %v783_v37, 5  ;;  %v786_v47 = vsub.s32 32, %v785_v42  ;;  %vm516_vm15 = vc.u32 %v2780_v36, %v2774_v32 }
 0x115   : > { %v626_v61 = vshll.u32 %v2788_v58, 30  ;;  %v788_v49 = vshll.u32 %v2513_v63, %v785_v42  ;;  %v791_v57 = vshll.u32 %v2514_v1, %v785_v42  ;;  %v2149_v60 = vadd.s32 4294967169, %v671_v38 }
 0x116   : > { %v518_v55 = vsel %vm516_vm15, %v517_v3, %v2775_v33  ;;  %v789_v56 = vshrl.u32 %v2514_v1, %v786_v47  ;;  %v794_v62 = vshll.u32 %v2515_v4, %v785_v42  ;;  %v792_v54 = vshrl.u32 %v2515_v4, %v786_v47 }
 0x117   : > { %v2806_v53 = vsub.s32 %v623_v19, %v626_v61  ;;  %v519_v0 = vadd.s32 %v518_v55, %v514_v43  ;;  %v795_v2 = vshrl.u32 %v2516_v6, %v786_v47  ;;  %v797_v5 = vshll.u32 %v2516_v6, %v785_v42 }
 0x118   : > { %v790_v9 = vor.u32 %v789_v56, %v788_v49  ;;  %v798_v10 = vshrl.u32 %v2517_v8, %v786_v47  ;;  %v800_v11 = vshll.u32 %v2517_v8, %v785_v42  ;;  %v793_v52 = vor.u32 %v792_v54, %v791_v57 }
 0x119   : > { %v629_v7 = vsub.s32 0, %v2806_v53  ;;  %v520_v12 = vadd.s32 536870912, %v519_v0  ;;  %v796_v13 = vor.u32 %v795_v2, %v794_v62  ;;  %v801_v14 = vshrl.u32 %v2518_v15, %v786_v47 }
 0x11a   : > { %v787_v59 = vshrl.u32 %v2513_v63, %v786_v47  ;;  %v799_v17 = vor.u32 %v798_v10, %v797_v5  ;;  %vm803_vm0 = vcmp.lt.s32.totalorder %v784_v46, 1  ;;  %vm805_vm1 = vcmp.lt.s32.totalorder %v784_v46, 3 }
 0x11b   : > { %v2146_v16 = vmin.u32 %v629_v7, %v2806_v53  ;;  %v521_v18 = vshrl.u32 %v520_v12, 30  ;;  %v802_v19 = vor.u32 %v801_v14, %v800_v11  ;;  %vm806_vm2 = vcmp.lt.s32.totalorder %v784_v46, 4 }
 0x11c   : > { %v807_v21 = vsel %vm803_vm0, %v787_v59, %v790_v9  ;;  %v808_v22 = vsel %vm806_vm2, %v796_v13, 2102212464  ;;  %v811_v23 = vsel %vm803_vm0, %v790_v9, %v793_v52  ;;  %v812_v29 = vsel %vm806_vm2, %v799_v17, 920167782 }
 0x11d   : > { %v631_v20 = vclz %v2146_v16  ;;  %v522_v25 = vshll.u32 %v521_v18, 30  ;;  %v809_v28 = vsel %vm805_vm1, %v793_v52, %v808_v22  ;;  %v815_v31 = vsel %vm803_vm0, %v793_v52, %v796_v13 }
 0x11e   : > { %vm804_vm3 = vcmp.lt.s32.totalorder %v784_v46, 2  ;;  %v813_v34 = vsel %vm805_vm1, %v796_v13, %v812_v29  ;;  %v816_v37 = vsel %vm806_vm2, %v802_v19, 1326507024  ;;  %v619_v62 = vadd.s32 %v2747_v51, %v2744_v48 }
 0x11f   : > { %v2147_v33 = vadd.s32 4294967294, %v631_v20  ;;  %v2822_v38 = vsub.s32 %v519_v0, %v522_v25  ;;  %v810_v39 = vsel %vm804_vm3, %v807_v21, %v809_v28  ;;  %v814_v42 = vsel %vm804_vm3, %v811_v23, %v813_v34 }
 0x120   : > { %v817_v43 = vsel %vm805_vm1, %v799_v17, %v816_v37  ;;  %v2826_v3 = vmul.u32.u64.low %v2793_v44, %v814_v42  ;;  %v2827_v47 = vmul.u32.u64.high %v2793_v44, %v814_v42, %v2826_v3  ;;  %v677_v54 = vadd.s32 1, %v2149_v60 }
 0x121   : > { %vm2148_vm4 = vcmp.lt.s32.totalorder %v2147_v33, 0  ;;  %v818_v61 = vsel %vm804_vm3, %v815_v31, %v817_v43  ;;  %v525_v57 = vsub.s32 0, %v2822_v38  ;;  %v826_v7 = vmul.u32 %v2793_v44, %v810_v39 }
 0x122   : > { %v634_v49 = vsel %vm2148_vm4, 0, %v2147_v33  ;;  %v2832_v55 = vmul.u32.u64.low %v2793_v44, %v818_v61  ;;  %v2833_v56 = vmul.u32.u64.high %v2793_v44, %v818_v61, %v2832_v55  ;;  %v675_v9 = vor.u32 8388608, %v2797_v45 }
 0x123   : > { %v635_v0 = vsub.s32 32, %v634_v49  ;;  %v639_v46 = vsub.s32 4294967266, %v634_v49  ;;  %v636_v2 = vshll.u32 %v2806_v53, %v634_v49  ;;  %v2142_v5 = vmin.u32 %v525_v57, %v2822_v38 }
 0x124   : > { %v829_v12 = vadd.s32 1, %v2827_v47  ;;  %vm678_vm5 = vcmp.gt.s32.totalorder %v677_v54, 0  ;;  %vm828_vm6 = vc.u32 %v2833_v56, %v2826_v3  ;;  %v545_v51 = vsub.s32 4, %v521_v18 }
 0x125   : > { %v637_v10 = vshrl.u32 %v619_v62, %v635_v0  ;;  %v640_v11 = vadd.s32 127, %v639_v46  ;;  %v527_v52 = vclz %v2142_v5  ;;  %v679_v48 = vsel %vm678_vm5, %v677_v54, 0 }
 0x126   : > { %vm461_vm7 = vcmp.lt.s32.totalorder %v2686_v26, 0  ;;  %v830_v53 = vsel %vm828_vm6, %v829_v12, %v2827_v47  ;;  %v515_v44 = vadd.s32 %v2774_v32, %v2780_v36  ;;  %v681_v16 = vand.u32 31, %v679_v48 }
 0x127   : > { %v638_v60 = vor.u32 %v637_v10, %v636_v2  ;;  %v641_v13 = vshll.u32 %v640_v11, 23  ;;  %v2143_v45 = vadd.s32 4294967294, %v527_v52  ;;  %v831_v14 = vadd.s32 %v830_v53, %v826_v7 }
 0x128   : > { %v2848_v17 = vshrl.u32 %v679_v48, 5  ;;  %v2850_v19 = vshll.u32 %v675_v9, 8  ;;  %v649_v20 = vsub.s32 4, %v2788_v58  ;;  %v682_v22 = vsub.s32 32, %v681_v16 }
 0x129   : > { %v642_v59 = vor.u32 4788187, %v641_v13  ;;  %vm2144_vm8 = vcmp.lt.s32.totalorder %v2143_v45, 0  ;;  %v832_v21 = vadd.s32 536870912, %v831_v14  ;;  %v2855_v23 = vsel %vm461_vm7, %v545_v51, %v521_v18 }
 0x12a   : > { %v645_v28 = vcvt.s32.f32 %v638_v60  ;;  %v530_v32 = vsel %vm2144_vm8, 0, %v2143_v45  ;;  %v684_v36 = vshll.u32 %v2513_v63, %v681_v16  ;;  %v687_v34 = vshll.u32 %v2514_v1, %v681_v16 }
 0x12b   : > { %v643_v25 = vand.u32 2147483647, %v642_v59  ;;  %v531_v29 = vsub.s32 32, %v530_v32  ;;  %v535_v31 = vsub.s32 4294967266, %v530_v32  ;;  %v2858_v33 = vshrl.u32 %v832_v21, 30 }
 0x12c   : > { %v532_v39 = vshll.u32 %v2822_v38, %v530_v32  ;;  %v685_v42 = vshrl.u32 %v2514_v1, %v682_v22  ;;  %v688_v43 = vshrl.u32 %v2515_v4, %v682_v22  ;;  %vm565_vm9 = vcmp.lt.s32.totalorder %v2684_v24, 0 }
 0x12d   : > { %v646_v37 = vmul.f32 %v645_v28, %v643_v25  ;;  %v533_v18 = vshrl.u32 %v515_v44, %v531_v29  ;;  %v536_v61 = vadd.s32 127, %v535_v31  ;;  %v834_v47 = vshll.u32 %v2858_v33, 30 }
 0x12e   : > { %v691_v49 = vshrl.u32 %v2516_v6, %v682_v22  ;;  %v686_v57 = vor.u32 %v685_v42, %v684_v36  ;;  %v689_v55 = vor.u32 %v688_v43, %v687_v34  ;;  %v690_v62 = vshll.u32 %v2515_v4, %v681_v16 }
 0x12f   : > { %vm699_vm10 = vcmp.lt.s32.totalorder %v2848_v17, 1  ;;  %v534_v0 = vor.u32 %v533_v18, %v532_v39  ;;  %v537_v38 = vshll.u32 %v536_v61, 23  ;;  %v2869_v46 = vsub.s32 %v831_v14, %v834_v47 }
 0x130   : > { %v693_v54 = vshll.u32 %v2516_v6, %v681_v16  ;;  %v692_v2 = vor.u32 %v691_v49, %v690_v62  ;;  %v694_v5 = vshrl.u32 %v2517_v8, %v682_v22  ;;  %v696_v7 = vshll.u32 %v2517_v8, %v681_v16 }
 0x131   : > { %v697_v9 = vshrl.u32 %v2518_v15, %v682_v22  ;;  %v647_v10 = vxor.u32 2147483648, %v646_v37  ;;  %v538_v11 = vor.u32 4788187, %v537_v38  ;;  %v837_v12 = vsub.s32 0, %v2869_v46 }
 0x132   : > { %v683_v52 = vshrl.u32 %v2513_v63, %v682_v22  ;;  %v541_v48 = vcvt.s32.f32 %v534_v0  ;;  %v695_v51 = vor.u32 %v694_v5, %v693_v54  ;;  %vm701_vm11 = vcmp.lt.s32.totalorder %v2848_v17, 3 }
 0x133   : > { %v698_v60 = vor.u32 %v697_v9, %v696_v7  ;;  %v539_v13 = vand.u32 2147483647, %v538_v11  ;;  %v2154_v53 = vmin.u32 %v837_v12, %v2869_v46  ;;  %vm702_vm12 = vcmp.lt.s32.totalorder %v2848_v17, 4 }
 0x134   : > { %v707_v44 = vsel %vm699_vm10, %v686_v57, %v689_v55  ;;  %v704_v45 = vsel %vm702_vm12, %v692_v2, 2102212464  ;;  %v708_v14 = vsel %vm702_vm12, %v695_v51, 920167782  ;;  %v711_v16 = vsel %vm699_vm10, %v689_v55, %v692_v2 }
 0x135   : > { %v712_v59 = vsel %vm702_vm12, %v698_v60, 1326507024  ;;  %v542_v21 = vmul.f32 %v541_v48, %v539_v13  ;;  %v839_v22 = vclz %v2154_v53  ;;  %vm700_vm13 = vcmp.lt.s32.totalorder %v2848_v17, 2 }
 0x136   : > { %v709_v25 = vsel %vm701_vm11, %v692_v2, %v708_v14  ;;  %v648_v28 = vsel %vm565_vm9, %v647_v10, %v646_v37  ;;  %v703_v32 = vsel %vm699_vm10, %v683_v52, %v686_v57  ;;  %v713_v29 = vsel %vm701_vm11, %v695_v51, %v712_v59 }
 0x137   : > { %v710_v36 = vsel %vm700_vm13, %v707_v44, %v709_v25  ;;  %v543_v31 = vxor.u32 2147483648, %v542_v21  ;;  %v2155_v34 = vadd.s32 4294967294, %v839_v22  ;;  %v705_v39 = vsel %vm701_vm11, %v689_v55, %v704_v45 }
 0x138   : > { %v714_v42 = vsel %vm700_vm13, %v711_v16, %v713_v29  ;;  %v2904_v18 = vmul.u32.u64.low %v2850_v19, %v710_v36  ;;  %v2905_v61 = vmul.u32.u64.high %v2850_v19, %v710_v36, %v2904_v18  ;;  %vm2912_vm0 = vcmp.le.f32.partialorder %v459_v30, 0.7853982 }
 0x139   : > { %v2900_v43 = vmul.u32.u64.low %v2850_v19, %v714_v42  ;;  %v2901_v37 = vmul.u32.u64.high %v2850_v19, %v714_v42, %v2900_v43  ;;  %v544_v47 = vsel %vm461_vm7, %v543_v31, %v542_v21  ;;  %vm2156_vm15 = vcmp.lt.s32.totalorder %v2155_v34, 0 }
 0x13a   : > { %v842_v57 = vsel %vm2156_vm15, 0, %v2155_v34  ;;  %v706_v55 = vsel %vm700_vm13, %v703_v32, %v705_v39  ;;  %v547_v62 = vsel %vm2912_vm0, %v2686_v26, %v544_v47  ;;  %vm2923_vm1 = vcmp.le.f32.partialorder %v563_v27, 0.7853982 }
 0x13b   : > { %v847_v38 = vsub.s32 4294967266, %v842_v57  ;;  %v548_v30 = vsel %vm2912_vm0, 0, %v2855_v23  ;;  %2400 = vcosq.f32 %v547_v62  ;;  %v651_v17 = vsel %vm2923_vm1, %v2684_v24, %v648_v28 }
 0x13c   : > { %vm724_vm2 = vc.u32 %v2901_v37, %v2904_v18  ;;  %v725_v54 = vadd.s32 1, %v2905_v61  ;;  %2402 = vsinq.f32 %v547_v62  ;;  %v650_v27 = vsel %vm565_vm9, %v649_v20, %v2788_v58 }
 0x13d   : > { %v843_v2 = vsub.s32 32, %v842_v57  ;;  %v848_v5 = vadd.s32 127, %v847_v38  ;;  %v722_v23 = vmul.u32 %v2850_v19, %v706_v55  ;;  %v827_v7 = vadd.s32 %v2826_v3, %v2833_v56 }
 0x13e   : > { %v726_v9 = vsel %vm724_vm2, %v725_v54, %v2905_v61  ;;  %v552_v10 = vadd.s32 3, %v548_v30  ;;  %2404 = vcosq.f32 %v651_v17  ;;  %v652_v52 = vsel %vm2923_vm1, 0, %v650_v27 }
 0x13f   : > { %v849_v11 = vshll.u32 %v848_v5, 23  ;;  %v727_v12 = vadd.s32 %v726_v9, %v722_v23  ;;  %2406 = vsinq.f32 %v651_v17  ;;  %v845_v48 = vshrl.u32 %v827_v7, %v843_v2 }
 0x140   : > { %v656_v58 = vadd.s32 3, %v652_v52  ;;  %v844_v20 = vshll.u32 %v2869_v46, %v842_v57  ;;  %v553_v13 = vand.u32 3, %v552_v10  ;;  %vm551_vm6 = vweird.f32 %v2686_v26 }
 0x141   : > { %v728_v51 = vadd.s32 536870912, %v727_v12  ;;  %v850_v60 = vor.u32 4788187, %v849_v11  ;;  %vm655_vm10 = vweird.f32 %v2684_v24  ;;  %vm773_vm12 = vcmp.lt.s32.totalorder %v2694_v35, 0 }
 0x142   : > { %v846_v56 = vor.u32 %v845_v48, %v844_v20  ;;  %v657_v14 = vand.u32 3, %v656_v58  ;;  %vm558_vm3 = vcmp.eq.s32.totalorder %v553_v13, 2  ;;  %vm554_vm4 = vcmp.lt.s32.totalorder %v553_v13, 2 }
 0x143   : > { %v2948_v19 = vshrl.u32 %v728_v51, 30  ;;  %v851_v16 = vand.u32 2147483647, %v850_v60  ;;  %vm555_vm5 = vcmp.eq.s32.totalorder %v553_v13, 0  ;;  %v723_v17 = vadd.s32 %v2904_v18, %v2901_v37 }
 0x144   : > { %v853_v28 = vcvt.s32.f32 %v846_v56  ;;  %vm662_vm7 = vcmp.eq.s32.totalorder %v657_v14, 2  ;;  %vm659_vm8 = vcmp.eq.s32.totalorder %v657_v14, 0  ;;  %vm658_vm9 = vcmp.lt.s32.totalorder %v657_v14, 2 }
 0x145   : > { %v2401_v3 = vpop.eup %2400  ;;  %v730_v53 = vshll.u32 %v2948_v19, 30  ;;  %vm2960_vm13 = vcmp.le.f32.partialorder %v771_v40, 0.7853982  ;;  %v857_v11 = vsub.s32 4, %v2858_v33  ;;  %v753_v48 = vsub.s32 4, %v2948_v19 }
 0x146   : > { %v2403_v44 = vpop.eup %2402  ;;  %v559_v45 = vxor.u32 2147483648, %v2401_v3  ;;  %v854_v39 = vmul.f32 %v853_v28, %v851_v16  ;;  %vm669_vm15 = vcmp.lt.s32.totalorder %v2699_v41, 0  ;;  %vm668_vm0 = vcmp.le.f32.partialorder %v667_v50, 0.7853982 }
 0x147   : > { %v731_v59 = vsub.s32 %v727_v12, %v730_v53  ;;  %v556_v21 = vxor.u32 2147483648, %v2403_v44  ;;  %v858_v40 = vsel %vm773_vm12, %v857_v11, %v2858_v33  ;;  %v754_v60 = vsel %vm669_vm15, %v753_v48, %v2948_v19 }
 0x148   : > { %v2405_v22 = vpop.eup %2404  ;;  %v560_v25 = vsel %vm558_vm3, %v559_v45, %v2403_v44  ;;  %v855_v62 = vxor.u32 2147483648, %v854_v39  ;;  %v860_v58 = vsel %vm2960_vm13, 0, %v858_v40  ;;  %v756_v53 = vsel %vm668_vm0, 0, %v754_v60 }
 0x149   : > { %v2407_v46 = vpop.eup %2406  ;;  %v733_v32 = vsub.s32 0, %v731_v59  ;;  %v557_v36 = vsel %vm555_vm5, %v2401_v3, %v556_v21  ;;  %v663_v29 = vxor.u32 2147483648, %v2405_v22  ;;  %v864_v3 = vadd.s32 3, %v860_v58 }
 0x14a   : > { %v561_v31 = vsel %vm554_vm4, %v557_v36, %v560_v25  ;;  %v660_v34 = vxor.u32 2147483648, %v2407_v46  ;;  %v856_v30 = vsel %vm773_vm12, %v855_v62, %v854_v39  ;;  %v760_v45 = vadd.s32 3, %v756_v53 }
 0x14b   : > { %v2150_v42 = vmin.u32 %v733_v32, %v731_v59  ;;  %v664_v43 = vsel %vm662_vm7, %v663_v29, %v2407_v46  ;;  %v562_v61 = vsel %vm551_vm6, nan, %v561_v31  ;;  %v859_v7 = vsel %vm2960_vm13, %v2694_v35, %v856_v30 }
 0x14c   : > { %v661_v47 = vsel %vm659_vm8, %v2405_v22, %v660_v34  ;;  %2408 = vcosq.f32 %v859_v7  ;;  %v865_v44 = vand.u32 3, %v864_v3  ;;  %vm863_vm6 = vweird.f32 %v2694_v35  ;;  %v878_v35 = vld [vmem:[%s3648_s3 + $0x18] sm:$0xff] }
 0x14d   : > { %v735_v49 = vclz %v2150_v42  ;;  %v665_v57 = vsel %vm658_vm9, %v661_v47, %v664_v43  ;;  %2410 = vsinq.f32 %v859_v7  ;;  %vm759_vm8 = vweird.f32 %v2699_v41  ;;  %v876_v42 = vld [vmem:[%s3648_s3 + $0x8] sm:$0xff]  ;;  %v877_v43 = vld [vmem:[%s3648_s3 + $0x10] sm:$0xff]  ;;  %v886_v47 = vpop.permute.xlu0 %885 }
 0x14e   : > { %v666_v55 = vsel %vm655_vm10, nan, %v665_v57  ;;  %vm867_vm1 = vcmp.eq.s32.totalorder %v865_v44, 0  ;;  %vm870_vm2 = vcmp.eq.s32.totalorder %v865_v44, 2  ;;  %vm866_vm3 = vcmp.lt.s32.totalorder %v865_v44, 2 }
 0x14f   : > { %v2151_v0 = vadd.s32 4294967294, %v735_v49  ;;  %v2277_v38 = vpack.c.bf16 %v666_v55, %v562_v61 }
 0x151   : > { %vm2152_vm11 = vcmp.lt.s32.totalorder %v2151_v0, 0  ;;  %2278 = vmatprep.subr.bf16.mxu1 %v2277_v38  ;;  %v896_v7 = vpop.permute.xlu0 %895 }
 0x152   : > { %v738_v26 = vsel %vm2152_vm11, 0, %v2151_v0  ;;  %2280 = vmatpush3.bf16.msra.mxu1 %v2277_v38 }
 0x153   : > { %v739_v54 = vsub.s32 32, %v738_v26  ;;  %v743_v27 = vsub.s32 4294967266, %v738_v26  ;;  %v740_v2 = vshll.u32 %v731_v59, %v738_v26  ;;  %v761_v59 = vand.u32 3, %v760_v45 }
 0x155   : > { %v741_v5 = vshrl.u32 %v723_v17, %v739_v54  ;;  %v744_v23 = vadd.s32 127, %v743_v27  ;;  %vm766_vm4 = vcmp.eq.s32.totalorder %v761_v59, 2  ;;  %vm763_vm5 = vcmp.eq.s32.totalorder %v761_v59, 0 }
 0x156   : > { %v2409_v56 = vpop.eup %2408  ;;  %vm762_vm7 = vcmp.lt.s32.totalorder %v761_v59, 2 }
 0x157   : > { %v742_v9 = vor.u32 %v741_v5, %v740_v2  ;;  %v745_v10 = vshll.u32 %v744_v23, 23  ;;  %v2411_v33 = vpop.eup %2410  ;;  %v871_v16 = vxor.u32 2147483648, %v2409_v56 }
 0x158   : > { %v868_v14 = vxor.u32 2147483648, %v2411_v33 }
 0x159   : > { %v746_v37 = vor.u32 4788187, %v745_v10  ;;  %v749_v12 = vcvt.s32.f32 %v742_v9  ;;  %v872_v50 = vsel %vm870_vm2, %v871_v16, %v2411_v33 }
 0x15a   : > { %v869_v21 = vsel %vm867_vm1, %v2409_v56, %v868_v14 }
 0x15b   : > { %v747_v18 = vand.u32 2147483647, %v746_v37  ;;  %v873_v46 = vsel %vm866_vm3, %v869_v21, %v872_v50 }
 0x15c   : > { %v874_v29 = vsel %vm863_vm6, nan, %v873_v46 }
 0x15d   : > { %v750_v52 = vmul.f32 %v749_v12, %v747_v18 }
 0x15f   : > { %v751_v51 = vxor.u32 2147483648, %v750_v52 }
 0x161   : > { %v752_v20 = vsel %vm669_vm15, %v751_v51, %v750_v52 }
 0x162   : > { %v755_v13 = vsel %vm668_vm0, %v2699_v41, %v752_v20  ;;  %v891_v41 = vpop.permute.xlu1 %890  ;;  %v1417_v20 = vld [vmem:[%s3650_s5] sm:$0xff] }
 0x163   : > { %2412 = vcosq.f32 %v755_v13  ;;  %2260 = vmatprep.mubr.msk.f32.mxu0 %vm903_vm14, %v1417_v20 }
 0x164   : > { %2414 = vsinq.f32 %v755_v13 }
 0x166   : > { %v901_v38 = vpop.permute.xlu1 %900 }
 0x16d   : > { %v2413_v22 = vpop.eup %2412 }
 0x16e   : > { %v2415_v19 = vpop.eup %2414  ;;  %v767_v25 = vxor.u32 2147483648, %v2413_v22 }
 0x16f   : > { %v764_v28 = vxor.u32 2147483648, %v2415_v19 }
 0x170   : > { %v768_v32 = vsel %vm766_vm4, %v767_v25, %v2415_v19 }
 0x171   : > { %v765_v36 = vsel %vm763_vm5, %v2413_v22, %v764_v28 }
 0x172   : > { %v769_v31 = vsel %vm762_vm7, %v765_v36, %v768_v32 }
 0x173   : > { %v770_v34 = vsel %vm759_vm8, nan, %v769_v31 }
 0x174   : > { %v2281_v39 = vpack.c.bf16 %v874_v29, %v770_v34 }
 0x176   : > { %2282 = vmatprep.subr.bf16.mxu1 %v2281_v39 }
 0x177   : > { %2284 = vmatpush3.bf16.msra.mxu1 %v2281_v39 }
 0x17a   : > { %2247 = vmatmul.mubr.msk.f32.vlgmr.msra.gmra.mrb[0].mxu1 %vm903_vm14, %v876_v42 }
 0x17b   : > { %2249 = vmatprep.mubr.msk.f32.mxu1 %vm903_vm14, %v877_v43 }
 0x17e   : > { %2250 = vmatmul.mubr.msk.f32.gmra.mrb[2].mxu1 %vm903_vm14, %v878_v35 }
 0x24d   : > { %v2248_v61 = vpop.f32.mrb[0].mxu1 }
 0x24e   : > { %v2993_v49 = vadd.f32 %v2248_v61, %v891_v41  ;;  %v982_v57 = vpop.f32.mrb[1].mxu1 }
 0x24f   : > { %v2995_v55 = vadd.f32 %v982_v57, %v886_v47 }
 0x250   : > { %v1105_v62 = vand.u32 2147483647, %v2993_v49  ;;  %v1108_v0 = vand.u32 2139095040, %v2993_v49 }
 0x251   : > { %v1001_v26 = vand.u32 2147483647, %v2995_v55  ;;  %v1004_v30 = vand.u32 2139095040, %v2995_v55  ;;  %v2251_v17 = vpop.f32.mrb[2].mxu1 }
 0x252   : > { %v1109_v54 = vshrl.u32 %v1108_v0, 23  ;;  %v1112_v27 = vand.u32 8388607, %v1105_v62  ;;  %v3003_v24 = vadd.f32 %v2251_v17, %v901_v38  ;;  %v992_v2 = vpop.f32.mrb[3].mxu1 }
 0x253   : > { %v1005_v5 = vshrl.u32 %v1004_v30, 23  ;;  %v1008_v23 = vand.u32 8388607, %v1001_v26  ;;  %v3009_v18 = vadd.f32 %v992_v2, %v896_v7 }
 0x254   : > { %v2165_v9 = vadd.s32 4294967169, %v1109_v54  ;;  %v1313_v10 = vand.u32 2147483647, %v3003_v24  ;;  %v1316_v37 = vand.u32 2139095040, %v3003_v24  ;;  %v1113_v12 = vor.u32 8388608, %v1112_v27 }
 0x255   : > { %v2161_v11 = vadd.s32 4294967169, %v1005_v5  ;;  %v1009_v52 = vor.u32 8388608, %v1008_v23  ;;  %v1209_v3 = vand.u32 2147483647, %v3009_v18 }
 0x256   : > { %v1115_v40 = vadd.s32 1, %v2165_v9  ;;  %v1317_v51 = vshrl.u32 %v1316_v37, 23  ;;  %v3013_v58 = vand.u32 8388607, %v1313_v10  ;;  %v3020_v53 = vshll.u32 %v1113_v12, 8 }
 0x257   : > { %v1011_v48 = vadd.s32 1, %v2161_v11  ;;  %v3024_v16 = vshll.u32 %v1009_v52, 8 }
 0x258   : > { %vm1116_vm9 = vcmp.gt.s32.totalorder %v1115_v40, 0  ;;  %v2173_v13 = vadd.s32 4294967169, %v1317_v51  ;;  %v1321_v59 = vor.u32 8388608, %v3013_v58 }
 0x259   : > { %v1117_v60 = vsel %vm1116_vm9, %v1115_v40, 0  ;;  %vm1012_vm10 = vcmp.gt.s32.totalorder %v1011_v48, 0 }
 0x25a   : > { %v1118_v56 = vshrl.u32 %v1117_v60, 5  ;;  %v1119_v33 = vand.u32 31, %v1117_v60  ;;  %v1013_v44 = vsel %vm1012_vm10, %v1011_v48, 0  ;;  %v3029_v19 = vadd.s32 1, %v2173_v13 }
 0x25b   : > { %v3022_v45 = vshrl.u32 %v1013_v44, 5  ;;  %v1015_v14 = vand.u32 31, %v1013_v44 }
 0x25c   : > { %v1120_v21 = vsub.s32 32, %v1119_v33  ;;  %v1122_v50 = vshll.u32 %v2513_v63, %v1119_v33  ;;  %v1125_v22 = vshll.u32 %v2514_v1, %v1119_v33  ;;  %v1128_v25 = vshll.u32 %v2515_v4, %v1119_v33 }
 0x25d   : > { %v1131_v46 = vshll.u32 %v2516_v6, %v1119_v33  ;;  %v1134_v28 = vshll.u32 %v2517_v8, %v1119_v33  ;;  %vm1137_vm11 = vcmp.lt.s32.totalorder %v1118_v56, 1  ;;  %vm1138_vm12 = vcmp.lt.s32.totalorder %v1118_v56, 2 }
 0x25e   : > { %v1123_v32 = vshrl.u32 %v2514_v1, %v1120_v21  ;;  %v1126_v36 = vshrl.u32 %v2515_v4, %v1120_v21  ;;  %v1129_v29 = vshrl.u32 %v2516_v6, %v1120_v21  ;;  %v1121_v31 = vshrl.u32 %v2513_v63, %v1120_v21 }
 0x25f   : > { %v1132_v34 = vshrl.u32 %v2517_v8, %v1120_v21  ;;  %v1135_v39 = vshrl.u32 %v2518_v15, %v1120_v21  ;;  %vm1139_vm13 = vcmp.lt.s32.totalorder %v1118_v56, 3  ;;  %v1016_v41 = vsub.s32 32, %v1015_v14 }
 0x260   : > { %v1124_v42 = vor.u32 %v1123_v32, %v1122_v50  ;;  %v1127_v43 = vor.u32 %v1126_v36, %v1125_v22  ;;  %v1130_v35 = vor.u32 %v1129_v29, %v1128_v25  ;;  %vm1140_vm15 = vcmp.lt.s32.totalorder %v1118_v56, 4 }
 0x261   : > { %v1133_v61 = vor.u32 %v1132_v34, %v1131_v46  ;;  %v1136_v47 = vor.u32 %v1135_v39, %v1134_v28  ;;  %v1018_v57 = vshll.u32 %v2513_v63, %v1015_v14  ;;  %v1021_v5 = vshll.u32 %v2514_v1, %v1015_v14 }
 0x262   : > { %v1141_v0 = vsel %vm1137_vm11, %v1121_v31, %v1124_v42  ;;  %v1142_v38 = vsel %vm1140_vm15, %v1130_v35, 2102212464  ;;  %v1145_v30 = vsel %vm1137_vm11, %v1124_v42, %v1127_v43  ;;  %v1149_v17 = vsel %vm1137_vm11, %v1127_v43, %v1130_v35 }
 0x263   : > { %v1143_v54 = vsel %vm1139_vm13, %v1127_v43, %v1142_v38  ;;  %v1146_v27 = vsel %vm1140_vm15, %v1133_v61, 920167782  ;;  %v1150_v2 = vsel %vm1140_vm15, %v1136_v47, 1326507024  ;;  %v1017_v9 = vshrl.u32 %v2513_v63, %v1016_v41 }
 0x264   : > { %v1147_v23 = vsel %vm1139_vm13, %v1130_v35, %v1146_v27  ;;  %v1151_v7 = vsel %vm1139_vm13, %v1133_v61, %v1150_v2  ;;  %v1019_v11 = vshrl.u32 %v2514_v1, %v1016_v41  ;;  %v1144_v37 = vsel %vm1138_vm12, %v1141_v0, %v1143_v54 }
 0x265   : > { %v1148_v12 = vsel %vm1138_vm12, %v1145_v30, %v1147_v23  ;;  %v1152_v40 = vsel %vm1138_vm12, %v1149_v17, %v1151_v7  ;;  %v1022_v52 = vshrl.u32 %v2515_v4, %v1016_v41  ;;  %v1024_v44 = vshll.u32 %v2515_v4, %v1015_v14 }
 0x266   : > { %v3055_v48 = vmul.u32.u64.low %v3020_v53, %v1152_v40  ;;  %v3056_v51 = vmul.u32.u64.high %v3020_v53, %v1152_v40, %v3055_v48  ;;  %v3059_v20 = vmul.u32.u64.low %v3020_v53, %v1148_v12  ;;  %v3060_v60 = vmul.u32.u64.high %v3020_v53, %v1148_v12, %v3059_v20 }
 0x267   : > { %v1020_v13 = vor.u32 %v1019_v11, %v1018_v57  ;;  %v1023_v33 = vor.u32 %v1022_v52, %v1021_v5  ;;  %v1025_v21 = vshrl.u32 %v2516_v6, %v1016_v41  ;;  %v1160_v50 = vmul.u32 %v3020_v53, %v1144_v37 }
 0x268   : > { %v1027_v56 = vshll.u32 %v2516_v6, %v1015_v14  ;;  %v1028_v22 = vshrl.u32 %v2517_v8, %v1016_v41  ;;  %v1031_v25 = vshrl.u32 %v2518_v15, %v1016_v41  ;;  %v1030_v28 = vshll.u32 %v2517_v8, %v1015_v14 }
 0x269   : > { %v1026_v46 = vor.u32 %v1025_v21, %v1024_v44  ;;  %vm1033_vm0 = vcmp.lt.s32.totalorder %v3022_v45, 1  ;;  %vm1034_vm1 = vcmp.lt.s32.totalorder %v3022_v45, 2  ;;  %vm1162_vm2 = vc.u32 %v3056_v51, %v3059_v20 }
 0x26a   : > { %v1163_v32 = vadd.s32 1, %v3060_v60  ;;  %v1029_v36 = vor.u32 %v1028_v22, %v1027_v56  ;;  %vm1035_vm3 = vcmp.lt.s32.totalorder %v3022_v45, 3  ;;  %v1032_v53 = vor.u32 %v1031_v25, %v1030_v28 }
 0x26b   : > { %vm1036_vm4 = vcmp.lt.s32.totalorder %v3022_v45, 4  ;;  %v1037_v29 = vsel %vm1033_vm0, %v1017_v9, %v1020_v13  ;;  %v1041_v31 = vsel %vm1033_vm0, %v1020_v13, %v1023_v33  ;;  %v1045_v42 = vsel %vm1033_vm0, %v1023_v33, %v1026_v46 }
 0x26c   : > { %v1164_v34 = vsel %vm1162_vm2, %v1163_v32, %v3060_v60  ;;  %v1038_v39 = vsel %vm1036_vm4, %v1026_v46, 2102212464  ;;  %v1042_v14 = vsel %vm1036_vm4, %v1029_v36, 920167782  ;;  %v1046_v61 = vsel %vm1036_vm4, %v1032_v53, 1326507024 }
 0x26d   : > { %v1165_v43 = vadd.s32 %v1164_v34, %v1160_v50  ;;  %v1039_v35 = vsel %vm1035_vm3, %v1023_v33, %v1038_v39  ;;  %v1043_v41 = vsel %vm1035_vm3, %v1026_v46, %v1042_v14  ;;  %v1047_v57 = vsel %vm1035_vm3, %v1029_v36, %v1046_v61 }
 0x26e   : > { %v1044_v47 = vsel %vm1034_vm1, %v1041_v31, %v1043_v41  ;;  %vm1324_vm5 = vcmp.gt.s32.totalorder %v3029_v19, 0  ;;  %v1212_v0 = vand.u32 2139095040, %v3009_v18  ;;  %v1048_v30 = vsel %vm1034_vm1, %v1045_v42, %v1047_v57 }
 0x26f   : > { %v1166_v38 = vadd.s32 536870912, %v1165_v43  ;;  %v3083_v17 = vmul.u32.u64.low %v3024_v16, %v1044_v47  ;;  %v3084_v54 = vmul.u32.u64.high %v3024_v16, %v1044_v47, %v3083_v17  ;;  %v1040_v27 = vsel %vm1034_vm1, %v1037_v29, %v1039_v35 }
 0x270   : > { %v3090_v2 = vmul.u32.u64.low %v3024_v16, %v1048_v30  ;;  %v3091_v5 = vmul.u32.u64.high %v3024_v16, %v1048_v30, %v3090_v2  ;;  %v1325_v23 = vsel %vm1324_vm5, %v3029_v19, 0  ;;  %v3097_v11 = vadd.s32 %v3059_v20, %v3056_v51 }
 0x271   : > { %v3094_v7 = vshrl.u32 %v1166_v38, 30  ;;  %v1327_v9 = vand.u32 31, %v1325_v23  ;;  %v3101_v37 = vshll.u32 %v1321_v59, 8  ;;  %v1213_v12 = vshrl.u32 %v1212_v0, 23 }
 0x272   : > { %v3105_v45 = vand.u32 8388607, %v1209_v3  ;;  %v1056_v52 = vmul.u32 %v3024_v16, %v1040_v27  ;;  %v1059_v19 = vadd.s32 1, %v3084_v54  ;;  %vm1058_vm6 = vc.u32 %v3091_v5, %v3083_v17 }
 0x273   : > { %v1168_v40 = vshll.u32 %v3094_v7, 30  ;;  %v1328_v48 = vsub.s32 32, %v1327_v9  ;;  %v1326_v51 = vshrl.u32 %v1325_v23, 5  ;;  %v1330_v58 = vshll.u32 %v2513_v63, %v1327_v9 }
 0x274   : > { %v1333_v59 = vshll.u32 %v2514_v1, %v1327_v9  ;;  %v1060_v60 = vsel %vm1058_vm6, %v1059_v19, %v3084_v54  ;;  %v1336_v33 = vshll.u32 %v2515_v4, %v1327_v9  ;;  %v1339_v50 = vshll.u32 %v2516_v6, %v1327_v9 }
 0x275   : > { %v3114_v20 = vsub.s32 %v1165_v43, %v1168_v40  ;;  %v1331_v13 = vshrl.u32 %v2514_v1, %v1328_v48  ;;  %v1061_v16 = vadd.s32 %v1060_v60, %v1056_v52  ;;  %v1334_v44 = vshrl.u32 %v2515_v4, %v1328_v48 }
 0x276   : > { %v1337_v21 = vshrl.u32 %v2516_v6, %v1328_v48  ;;  %v1340_v25 = vshrl.u32 %v2517_v8, %v1328_v48  ;;  %v1342_v46 = vshll.u32 %v2517_v8, %v1327_v9  ;;  %v1343_v53 = vshrl.u32 %v2518_v15, %v1328_v48 }
 0x277   : > { %v1171_v56 = vsub.s32 0, %v3114_v20  ;;  %v1332_v22 = vor.u32 %v1331_v13, %v1330_v58  ;;  %v1062_v28 = vadd.s32 536870912, %v1061_v16  ;;  %v1335_v32 = vor.u32 %v1334_v44, %v1333_v59 }
 0x278   : > { %v1338_v36 = vor.u32 %v1337_v21, %v1336_v33  ;;  %v1329_v31 = vshrl.u32 %v2513_v63, %v1328_v48  ;;  %v1341_v34 = vor.u32 %v1340_v25, %v1339_v50  ;;  %v2169_v39 = vadd.s32 4294967169, %v1213_v12 }
 0x279   : > { %v2166_v29 = vmin.u32 %v1171_v56, %v3114_v20  ;;  %v3128_v14 = vshrl.u32 %v1062_v28, 30  ;;  %v1344_v42 = vor.u32 %v1343_v53, %v1342_v46  ;;  %vm1345_vm7 = vcmp.lt.s32.totalorder %v1326_v51, 1 }
 0x27a   : > { %vm1348_vm8 = vcmp.lt.s32.totalorder %v1326_v51, 4  ;;  %vm1346_vm9 = vcmp.lt.s32.totalorder %v1326_v51, 2  ;;  %v1353_v41 = vsel %vm1345_vm7, %v1332_v22, %v1335_v32  ;;  %vm1347_vm10 = vcmp.lt.s32.totalorder %v1326_v51, 3 }
 0x27b   : > { %v1173_v43 = vclz %v2166_v29  ;;  %v1350_v35 = vsel %vm1348_vm8, %v1338_v36, 2102212464  ;;  %v1064_v61 = vshll.u32 %v3128_v14, 30  ;;  %v1354_v47 = vsel %vm1348_vm8, %v1341_v34, 920167782 }
 0x27c   : > { %v1357_v57 = vsel %vm1345_vm7, %v1335_v32, %v1338_v36  ;;  %v1349_v38 = vsel %vm1345_vm7, %v1329_v31, %v1332_v22  ;;  %v1355_v30 = vsel %vm1347_vm10, %v1338_v36, %v1354_v47  ;;  %v1358_v54 = vsel %vm1348_vm8, %v1344_v42, 1326507024 }
 0x27d   : > { %v2167_v0 = vadd.s32 4294967294, %v1173_v43  ;;  %v3131_v27 = vsub.s32 %v1061_v16, %v1064_v61  ;;  %v1351_v2 = vsel %vm1347_vm10, %v1335_v32, %v1350_v35  ;;  %v1356_v23 = vsel %vm1346_vm9, %v1353_v41, %v1355_v30 }
 0x27e   : > { %v1359_v9 = vsel %vm1347_vm10, %v1341_v34, %v1358_v54  ;;  %v3136_v40 = vmul.u32.u64.low %v3101_v37, %v1356_v23  ;;  %v3137_v52 = vmul.u32.u64.high %v3101_v37, %v1356_v23, %v3136_v40  ;;  %v1352_v33 = vsel %vm1346_vm9, %v1349_v38, %v1351_v2 }
 0x27f   : > { %vm2168_vm11 = vcmp.lt.s32.totalorder %v2167_v0, 0  ;;  %v1360_v12 = vsel %vm1346_vm9, %v1357_v57, %v1359_v9  ;;  %v1067_v48 = vsub.s32 0, %v3131_v27  ;;  %v1219_v16 = vadd.s32 1, %v2169_v39 }
 0x280   : > { %v1176_v19 = vsel %vm2168_vm11, 0, %v2167_v0  ;;  %v3142_v58 = vmul.u32.u64.low %v3101_v37, %v1360_v12  ;;  %v3143_v59 = vmul.u32.u64.high %v3101_v37, %v1360_v12, %v3142_v58  ;;  %v1217_v50 = vor.u32 8388608, %v3105_v45 }
 0x281   : > { %v1177_v60 = vsub.s32 32, %v1176_v19  ;;  %v1181_v13 = vsub.s32 4294967266, %v1176_v19  ;;  %v1178_v44 = vshll.u32 %v3114_v20, %v1176_v19  ;;  %v2162_v21 = vmin.u32 %v1067_v48, %v3131_v27 }
 0x282   : > { %v1371_v25 = vadd.s32 1, %v3137_v52  ;;  %vm1220_vm12 = vcmp.gt.s32.totalorder %v1219_v16, 0  ;;  %v1368_v28 = vmul.u32 %v3101_v37, %v1352_v33  ;;  %vm1370_vm13 = vc.u32 %v3143_v59, %v3136_v40 }
 0x283   : > { %v1179_v56 = vshrl.u32 %v3097_v11, %v1177_v60  ;;  %v1182_v22 = vadd.s32 127, %v1181_v13  ;;  %v1069_v46 = vclz %v2162_v21  ;;  %v1221_v51 = vsel %vm1220_vm12, %v1219_v16, 0 }
 0x284   : > { %v1057_v20 = vadd.s32 %v3083_v17, %v3091_v5  ;;  %v1372_v45 = vsel %vm1370_vm13, %v1371_v25, %v3137_v52  ;;  %vm1107_vm15 = vcmp.lt.s32.totalorder %v2993_v49, 0  ;;  %v3158_v29 = vshrl.u32 %v1221_v51, 5 }
 0x285   : > { %v1180_v32 = vor.u32 %v1179_v56, %v1178_v44  ;;  %v1183_v36 = vshll.u32 %v1182_v22, 23  ;;  %v2163_v11 = vadd.s32 4294967294, %v1069_v46  ;;  %v1373_v53 = vadd.s32 %v1372_v45, %v1368_v28 }
 0x286   : > { %v1223_v31 = vand.u32 31, %v1221_v51  ;;  %vm3162_vm0 = vcmp.le.f32.partialorder %v1105_v62, 0.7853982  ;;  %v3166_v39 = vshll.u32 %v1217_v50, 8  ;;  %v1087_v17 = vsub.s32 4, %v3128_v14 }
 0x287   : > { %v1184_v34 = vor.u32 4788187, %v1183_v36  ;;  %v1191_v5 = vsub.s32 4, %v3094_v7  ;;  %v1187_v42 = vcvt.s32.f32 %v1180_v32  ;;  %vm2164_vm1 = vcmp.lt.s32.totalorder %v2163_v11, 0 }
 0x288   : > { %v1374_v43 = vadd.s32 536870912, %v1373_v53  ;;  %v1224_v35 = vsub.s32 32, %v1223_v31  ;;  %v1072_v61 = vsel %vm2164_vm1, 0, %v2163_v11  ;;  %v1226_v47 = vshll.u32 %v2513_v63, %v1223_v31 }
 0x289   : > { %v1185_v41 = vand.u32 2147483647, %v1184_v34  ;;  %v1229_v62 = vshll.u32 %v2514_v1, %v1223_v31  ;;  %v1073_v57 = vsub.s32 32, %v1072_v61  ;;  %v1077_v0 = vsub.s32 4294967266, %v1072_v61 }
 0x28a   : > { %v3172_v38 = vshrl.u32 %v1374_v43, 30  ;;  %v1232_v30 = vshll.u32 %v2515_v4, %v1223_v31  ;;  %vm1241_vm2 = vcmp.lt.s32.totalorder %v3158_v29, 1  ;;  %v1074_v2 = vshll.u32 %v3131_v27, %v1072_v61 }
 0x28b   : > { %v1188_v54 = vmul.f32 %v1187_v42, %v1185_v41  ;;  %v1227_v23 = vshrl.u32 %v2514_v1, %v1224_v35  ;;  %v1230_v9 = vshrl.u32 %v2515_v4, %v1224_v35  ;;  %v1075_v12 = vshrl.u32 %v1057_v20, %v1073_v57 }
 0x28c   : > { %v1078_v52 = vadd.s32 127, %v1077_v0  ;;  %v1376_v19 = vshll.u32 %v3172_v38, 30  ;;  %v1233_v48 = vshrl.u32 %v2516_v6, %v1224_v35  ;;  %v1235_v33 = vshll.u32 %v2516_v6, %v1223_v31 }
 0x28d   : > { %v1189_v58 = vxor.u32 2147483648, %v1188_v54  ;;  %v1228_v60 = vor.u32 %v1227_v23, %v1226_v47  ;;  %v1231_v13 = vor.u32 %v1230_v9, %v1229_v62  ;;  %vm1003_vm3 = vcmp.lt.s32.totalorder %v2995_v55, 0 }
 0x28e   : > { %v1076_v16 = vor.u32 %v1075_v12, %v1074_v2  ;;  %v1079_v44 = vshll.u32 %v1078_v52, 23  ;;  %v3183_v27 = vsub.s32 %v1373_v53, %v1376_v19  ;;  %v1234_v21 = vor.u32 %v1233_v48, %v1232_v30 }
 0x28f   : > { %v1190_v50 = vsel %vm1107_vm15, %v1189_v58, %v1188_v54  ;;  %v1236_v56 = vshrl.u32 %v2517_v8, %v1224_v35  ;;  %v1238_v22 = vshll.u32 %v2517_v8, %v1223_v31  ;;  %v1239_v25 = vshrl.u32 %v2518_v15, %v1224_v35 }
 0x290   : > { %v1193_v46 = vsel %vm3162_vm0, %v2993_v49, %v1190_v50  ;;  %vm3195_vm4 = vcmp.le.f32.partialorder %v1001_v26, 0.7853982  ;;  %v1080_v51 = vor.u32 4788187, %v1079_v44  ;;  %v1379_v32 = vsub.s32 0, %v3183_v27 }
 0x291   : > { %v1225_v36 = vshrl.u32 %v2513_v63, %v1224_v35  ;;  %2416 = vcosq.f32 %v1193_v46  ;;  %v1083_v20 = vcvt.s32.f32 %v1076_v16  ;;  %v1237_v45 = vor.u32 %v1236_v56, %v1235_v33 }
 0x292   : > { %v1240_v11 = vor.u32 %v1239_v25, %v1238_v22  ;;  %2418 = vsinq.f32 %v1193_v46  ;;  %v1081_v53 = vand.u32 2147483647, %v1080_v51  ;;  %v2174_v31 = vmin.u32 %v1379_v32, %v3183_v27 }
 0x293   : > { %vm1244_vm5 = vcmp.lt.s32.totalorder %v3158_v29, 4  ;;  %vm1243_vm6 = vcmp.lt.s32.totalorder %v3158_v29, 3  ;;  %v1249_v34 = vsel %vm1241_vm2, %v1228_v60, %v1231_v13  ;;  %vm1242_vm7 = vcmp.lt.s32.totalorder %v3158_v29, 2 }
 0x294   : > { %v1246_v26 = vsel %vm1244_vm5, %v1234_v21, 2102212464  ;;  %v1250_v42 = vsel %vm1244_vm5, %v1237_v45, 920167782  ;;  %v1084_v43 = vmul.f32 %v1083_v20, %v1081_v53  ;;  %v1381_v41 = vclz %v2174_v31 }
 0x295   : > { %v1251_v35 = vsel %vm1243_vm6, %v1234_v21, %v1250_v42  ;;  %v1245_v61 = vsel %vm1241_vm2, %v1225_v36, %v1228_v60  ;;  %v1253_v62 = vsel %vm1241_vm2, %v1231_v13, %v1234_v21  ;;  %v1254_v57 = vsel %vm1244_vm5, %v1240_v11, 1326507024 }
 0x296   : > { %v1252_v47 = vsel %vm1242_vm7, %v1249_v34, %v1251_v35  ;;  %v1085_v0 = vxor.u32 2147483648, %v1084_v43  ;;  %v2175_v30 = vadd.s32 4294967294, %v1381_v41  ;;  %v1247_v54 = vsel %vm1243_vm6, %v1231_v13, %v1246_v26 }
 0x297   : > { %v1255_v2 = vsel %vm1243_vm6, %v1237_v45, %v1254_v57  ;;  %v3216_v9 = vmul.u32.u64.low %v3166_v39, %v1252_v47  ;;  %v3217_v12 = vmul.u32.u64.high %v3166_v39, %v1252_v47, %v3216_v9  ;;  %v1088_v52 = vsel %vm1003_vm3, %v1087_v17, %v3128_v14 }
 0x298   : > { %v1256_v23 = vsel %vm1242_vm7, %v1253_v62, %v1255_v2  ;;  %v1086_v19 = vsel %vm1003_vm3, %v1085_v0, %v1084_v43  ;;  %vm2176_vm8 = vcmp.lt.s32.totalorder %v2175_v30, 0  ;;  %v1248_v33 = vsel %vm1242_vm7, %v1245_v61, %v1247_v54 }
 0x299   : > { %v3228_v48 = vmul.u32.u64.low %v3166_v39, %v1256_v23  ;;  %v3229_v58 = vmul.u32.u64.high %v3166_v39, %v1256_v23, %v3228_v48  ;;  %v1089_v60 = vsel %vm3195_vm4, %v2995_v55, %v1086_v19  ;;  %v1384_v13 = vsel %vm2176_vm8, 0, %v2175_v30 }
 0x29a   : > { %v1192_v14 = vsel %vm1107_vm15, %v1191_v5, %v3094_v7  ;;  %2420 = vcosq.f32 %v1089_v60  ;;  %v1389_v17 = vsub.s32 4294967266, %v1384_v13  ;;  %v1090_v16 = vsel %vm3195_vm4, 0, %v1088_v52 }
 0x29b   : > { %v2417_v44 = vpop.eup %2416  ;;  %2422 = vsinq.f32 %v1089_v60  ;;  %v1267_v21 = vadd.s32 1, %v3217_v12  ;;  %v1194_v50 = vsel %vm3162_vm0, 0, %v1192_v14  ;;  %v1385_v56 = vsub.s32 32, %v1384_v13 }
 0x29c   : > { %v2419_v29 = vpop.eup %2418  ;;  %v1390_v22 = vadd.s32 127, %v1389_v17  ;;  %v1264_v25 = vmul.u32 %v3166_v39, %v1248_v33  ;;  %vm1266_vm9 = vc.u32 %v3229_v58, %v3216_v9  ;;  %v1094_v5 = vadd.s32 3, %v1090_v16 }
 0x29d   : > { %v1268_v7 = vsel %vm1266_vm9, %v1267_v21, %v3217_v12  ;;  %v1369_v46 = vadd.s32 %v3136_v40, %v3143_v59  ;;  %v1198_v32 = vadd.s32 3, %v1194_v50  ;;  %v1202_v36 = vxor.u32 2147483648, %v2419_v29 }
 0x29e   : > { %v1391_v28 = vshll.u32 %v1390_v22, 23  ;;  %v1269_v51 = vadd.s32 %v1268_v7, %v1264_v25  ;;  %v1205_v11 = vxor.u32 2147483648, %v2417_v44  ;;  %v1095_v53 = vand.u32 3, %v1094_v5 }
 0x29f   : > { %v1387_v37 = vshrl.u32 %v1369_v46, %v1385_v56  ;;  %v1199_v45 = vand.u32 3, %v1198_v32  ;;  %v1386_v39 = vshll.u32 %v3183_v27, %v1384_v13  ;;  %vm1197_vm15 = vweird.f32 %v2993_v49 }
 0x2a0   : > { %v1270_v20 = vadd.s32 536870912, %v1269_v51  ;;  %v1392_v31 = vor.u32 4788187, %v1391_v28  ;;  %vm1100_vm13 = vcmp.eq.s32.totalorder %v1095_v53, 2  ;;  %vm1097_vm0 = vcmp.eq.s32.totalorder %v1095_v53, 0 }
 0x2a1   : > { %vm1201_vm10 = vcmp.eq.s32.totalorder %v1199_v45, 0  ;;  %vm1204_vm11 = vcmp.eq.s32.totalorder %v1199_v45, 2  ;;  %v1388_v43 = vor.u32 %v1387_v37, %v1386_v39  ;;  %vm1200_vm12 = vcmp.lt.s32.totalorder %v1199_v45, 2 }
 0x2a2   : > { %v3253_v26 = vshrl.u32 %v1270_v20, 30  ;;  %v1203_v34 = vsel %vm1201_vm10, %v2417_v44, %v1202_v36  ;;  %v1206_v59 = vsel %vm1204_vm11, %v1205_v11, %v2419_v29  ;;  %v1393_v47 = vand.u32 2147483647, %v1392_v31 }
 0x2a3   : > { %v1207_v61 = vsel %vm1200_vm12, %v1203_v34, %v1206_v59  ;;  %v1395_v30 = vcvt.s32.f32 %v1388_v43  ;;  %vm1096_vm1 = vcmp.lt.s32.totalorder %v1095_v53, 2  ;;  %vm1093_vm2 = vweird.f32 %v2995_v55 }
 0x2a4   : > { %v2421_v42 = vpop.eup %2420  ;;  %v1272_v40 = vshll.u32 %v3253_v26, 30  ;;  %v1208_v57 = vsel %vm1197_vm15, nan, %v1207_v61  ;;  %vm1315_vm4 = vcmp.lt.s32.totalorder %v3003_v24, 0  ;;  %v1265_v55 = vadd.s32 %v3216_v9, %v3229_v58 }
 0x2a5   : > { %v2423_v41 = vpop.eup %2422  ;;  %v1101_v35 = vxor.u32 2147483648, %v2421_v42  ;;  %v1396_v12 = vmul.f32 %v1395_v30, %v1393_v47  ;;  %vm3265_vm5 = vcmp.le.f32.partialorder %v1313_v10, 0.7853982  ;;  %v1399_v7 = vsub.s32 4, %v3172_v38 }
 0x2a6   : > { %v1273_v27 = vsub.s32 %v1269_v51, %v1272_v40  ;;  %v1098_v62 = vxor.u32 2147483648, %v2423_v41  ;;  %v1295_v28 = vsub.s32 4, %v3253_v26  ;;  %vm1211_vm6 = vcmp.lt.s32.totalorder %v3009_v18, 0 }
 0x2a7   : > { %v1102_v0 = vsel %vm1100_vm13, %v1101_v35, %v2423_v41  ;;  %v1397_v49 = vxor.u32 2147483648, %v1396_v12  ;;  %v1400_v10 = vsel %vm1315_vm4, %v1399_v7, %v3172_v38  ;;  %vm1210_vm7 = vcmp.le.f32.partialorder %v1209_v3, 0.7853982 }
 0x2a8   : > { %v1275_v54 = vsub.s32 0, %v1273_v27  ;;  %v1099_v2 = vsel %vm1097_vm0, %v2421_v42, %v1098_v62  ;;  %v1402_v32 = vsel %vm3265_vm5, 0, %v1400_v10  ;;  %v1296_v37 = vsel %vm1211_vm6, %v1295_v28, %v3253_v26 }
 0x2a9   : > { %v1103_v23 = vsel %vm1096_vm1, %v1099_v2, %v1102_v0  ;;  %v1398_v14 = vsel %vm1315_vm4, %v1397_v49, %v1396_v12  ;;  %v1406_v45 = vadd.s32 3, %v1402_v32  ;;  %v1298_v53 = vsel %vm1210_vm7, 0, %v1296_v37  ;;  %v1419_v2 = vld [vmem:[%s3650_s5 + $0x10] sm:$0xff]  ;;  %v1428_v12 = vpop.permute.xlu0 %1427 }
 0x2aa   : > { %v2170_v52 = vmin.u32 %v1275_v54, %v1273_v27  ;;  %v1104_v19 = vsel %vm1093_vm2, nan, %v1103_v23  ;;  %v1401_v56 = vsel %vm3265_vm5, %v3003_v24, %v1398_v14  ;;  %v1302_v31 = vadd.s32 3, %v1298_v53  ;;  %v1418_v54 = vld [vmem:[%s3650_s5 + $0x8] sm:$0xff] }
 0x2ab   : > { %v2285_v48 = vpack.c.bf16 %v1208_v57, %v1104_v19  ;;  %2424 = vcosq.f32 %v1401_v56  ;;  %v1407_v39 = vand.u32 3, %v1406_v45  ;;  %vm1405_vm13 = vweird.f32 %v3003_v24  ;;  %v1420_v24 = vld [vmem:[%s3650_s5 + $0x18] sm:$0xff] }
 0x2ac   : > { %v1277_v60 = vclz %v2170_v52  ;;  %2426 = vsinq.f32 %v1401_v56  ;;  %v1303_v43 = vand.u32 3, %v1302_v31  ;;  %vm1301_vm0 = vweird.f32 %v3009_v18 }
 0x2ad   : > { %2286 = vmatprep.subr.bf16.mxu0 %v2285_v48  ;;  %vm1409_vm8 = vcmp.eq.s32.totalorder %v1407_v39, 0  ;;  %vm1412_vm9 = vcmp.eq.s32.totalorder %v1407_v39, 2  ;;  %vm1408_vm10 = vcmp.lt.s32.totalorder %v1407_v39, 2  ;;  %v1438_v56 = vpop.permute.xlu0 %1437 }
 0x2ae   : > { %v2171_v13 = vadd.s32 4294967294, %v1277_v60  ;;  %2288 = vmatpush3.bf16.msra.mxu0 %v2285_v48  ;;  %vm1308_vm11 = vcmp.eq.s32.totalorder %v1303_v43, 2  ;;  %vm1305_vm12 = vcmp.eq.s32.totalorder %v1303_v43, 0  ;;  %vm1304_vm15 = vcmp.lt.s32.totalorder %v1303_v43, 2 }
 0x2b0   : > { %vm2172_vm3 = vcmp.lt.s32.totalorder %v2171_v13, 0 }
 0x2b1   : > { %v1280_v33 = vsel %vm2172_vm3, 0, %v2171_v13 }
 0x2b2   : > { %v1281_v17 = vsub.s32 32, %v1280_v33  ;;  %v1285_v16 = vsub.s32 4294967266, %v1280_v33  ;;  %v1282_v21 = vshll.u32 %v1273_v27, %v1280_v33 }
 0x2b4   : > { %v1283_v50 = vshrl.u32 %v1265_v55, %v1281_v17  ;;  %v1286_v29 = vadd.s32 127, %v1285_v16 }
 0x2b5   : > { %v2425_v11 = vpop.eup %2424 }
 0x2b6   : > { %v1284_v22 = vor.u32 %v1283_v50, %v1282_v21  ;;  %v1287_v25 = vshll.u32 %v1286_v29, 23  ;;  %v2427_v38 = vpop.eup %2426  ;;  %v1413_v42 = vxor.u32 2147483648, %v2425_v11 }
 0x2b7   : > { %v1410_v34 = vxor.u32 2147483648, %v2427_v38 }
 0x2b8   : > { %v1288_v9 = vor.u32 4788187, %v1287_v25  ;;  %v1291_v5 = vcvt.s32.f32 %v1284_v22  ;;  %v1414_v3 = vsel %vm1412_vm9, %v1413_v42, %v2427_v38 }
 0x2b9   : > { %v1411_v40 = vsel %vm1409_vm8, %v2425_v11, %v1410_v34 }
 0x2ba   : > { %v1289_v58 = vand.u32 2147483647, %v1288_v9  ;;  %v1415_v35 = vsel %vm1408_vm10, %v1411_v40, %v1414_v3 }
 0x2bb   : > { %v1416_v62 = vsel %vm1405_vm13, nan, %v1415_v35 }
 0x2bc   : > { %v1292_v46 = vmul.f32 %v1291_v5, %v1289_v58 }
 0x2be   : > { %v1293_v51 = vxor.u32 2147483648, %v1292_v46 }
 0x2c0   : > { %v1294_v36 = vsel %vm1211_vm6, %v1293_v51, %v1292_v46 }
 0x2c1   : > { %v1297_v20 = vsel %vm1210_vm7, %v3009_v18, %v1294_v36  ;;  %v1433_v18 = vpop.permute.xlu1 %1432  ;;  %v1958_v36 = vld [vmem:[%s3652_s7] sm:$0xff] }
 0x2c2   : > { %2428 = vcosq.f32 %v1297_v20  ;;  %2274 = vmatprep.mubr.msk.f32.mxu1 %vm903_vm14, %v1958_v36 }
 0x2c3   : > { %2430 = vsinq.f32 %v1297_v20 }
 0x2c5   : > { %v1443_v13 = vpop.permute.xlu1 %1442 }
 0x2cc   : > { %v2429_v59 = vpop.eup %2428 }
 0x2cd   : > { %v2431_v26 = vpop.eup %2430  ;;  %v1309_v41 = vxor.u32 2147483648, %v2429_v59 }
 0x2ce   : > { %v1306_v61 = vxor.u32 2147483648, %v2431_v26 }
 0x2cf   : > { %v1310_v47 = vsel %vm1308_vm11, %v1309_v41, %v2431_v26 }
 0x2d0   : > { %v1307_v27 = vsel %vm1305_vm12, %v2429_v59, %v1306_v61 }
 0x2d1   : > { %v1311_v57 = vsel %vm1304_vm15, %v1307_v27, %v1310_v47 }
 0x2d2   : > { %v1312_v0 = vsel %vm1301_vm0, nan, %v1311_v57 }
 0x2d3   : > { %v2289_v30 = vpack.c.bf16 %v1416_v62, %v1312_v0 }
 0x2d5   : > { %2290 = vmatprep.subr.bf16.mxu0 %v2289_v30 }
 0x2d6   : > { %2292 = vmatpush3.bf16.msra.mxu0 %v2289_v30 }
 0x2d9   : > { %2261 = vmatmul.mubr.msk.f32.vlgmr.msra.gmra.mrb[4].mxu0 %vm903_vm14, %v1418_v54 }
 0x2da   : > { %2263 = vmatprep.mubr.msk.f32.mxu0 %vm903_vm14, %v1419_v2 }
 0x2dd   : > { %2264 = vmatmul.mubr.msk.f32.gmra.mrb[6].mxu0 %vm903_vm14, %v1420_v24 }
 0x3ac   : > { %v2262_v23 = vpop.f32.mrb[4].mxu0 }
 0x3ad   : > { %v3298_v52 = vadd.f32 %v2262_v23, %v1433_v18  ;;  %v1523_v19 = vpop.f32.mrb[5].mxu0 }
 0x3ae   : > { %v3300_v48 = vadd.f32 %v1523_v19, %v1428_v12 }
 0x3af   : > { %v1646_v60 = vand.u32 2147483647, %v3298_v52  ;;  %v1649_v49 = vand.u32 2139095040, %v3298_v52 }
 0x3b0   : > { %v1542_v33 = vand.u32 2147483647, %v3300_v48  ;;  %v1545_v14 = vand.u32 2139095040, %v3300_v48  ;;  %v2265_v55 = vpop.f32.mrb[6].mxu0 }
 0x3b1   : > { %v1650_v17 = vshrl.u32 %v1649_v49, 23  ;;  %v1653_v16 = vand.u32 8388607, %v1646_v60  ;;  %v3308_v44 = vadd.f32 %v2265_v55, %v1443_v13  ;;  %v1533_v21 = vpop.f32.mrb[7].mxu0 }
 0x3b2   : > { %v1546_v50 = vshrl.u32 %v1545_v14, 23  ;;  %v1549_v29 = vand.u32 8388607, %v1542_v33  ;;  %v3314_v58 = vadd.f32 %v1533_v21, %v1438_v56 }
 0x3b3   : > { %v2185_v22 = vadd.s32 4294967169, %v1650_v17  ;;  %v1854_v25 = vand.u32 2147483647, %v3308_v44  ;;  %v1857_v9 = vand.u32 2139095040, %v3308_v44  ;;  %v1654_v5 = vor.u32 8388608, %v1653_v16 }
 0x3b4   : > { %v2181_v7 = vadd.s32 4294967169, %v1546_v50  ;;  %v1550_v46 = vor.u32 8388608, %v1549_v29  ;;  %v1750_v45 = vand.u32 2147483647, %v3314_v58 }
 0x3b5   : > { %v1656_v10 = vadd.s32 1, %v2185_v22  ;;  %v1858_v51 = vshrl.u32 %v1857_v9, 23  ;;  %v3318_v32 = vand.u32 8388607, %v1854_v25  ;;  %v3325_v53 = vshll.u32 %v1654_v5, 8 }
 0x3b6   : > { %v1552_v28 = vadd.s32 1, %v2181_v7  ;;  %v3329_v42 = vshll.u32 %v1550_v46, 8 }
 0x3b7   : > { %vm1657_vm1 = vcmp.gt.s32.totalorder %v1656_v10, 0  ;;  %v2193_v20 = vadd.s32 4294967169, %v1858_v51  ;;  %v1862_v43 = vor.u32 8388608, %v3318_v32 }
 0x3b8   : > { %v1658_v37 = vsel %vm1657_vm1, %v1656_v10, 0  ;;  %vm1553_vm2 = vcmp.gt.s32.totalorder %v1552_v28, 0 }
 0x3b9   : > { %v1659_v11 = vshrl.u32 %v1658_v37, 5  ;;  %v1660_v38 = vand.u32 31, %v1658_v37  ;;  %v1554_v39 = vsel %vm1553_vm2, %v1552_v28, 0  ;;  %v3334_v26 = vadd.s32 1, %v2193_v20 }
 0x3ba   : > { %v3327_v31 = vshrl.u32 %v1554_v39, 5  ;;  %v1556_v34 = vand.u32 31, %v1554_v39 }
 0x3bb   : > { %v1661_v40 = vsub.s32 32, %v1660_v38  ;;  %v1663_v3 = vshll.u32 %v2513_v63, %v1660_v38  ;;  %v1666_v59 = vshll.u32 %v2514_v1, %v1660_v38  ;;  %v1669_v41 = vshll.u32 %v2515_v4, %v1660_v38 }
 0x3bc   : > { %v1672_v35 = vshll.u32 %v2516_v6, %v1660_v38  ;;  %v1675_v61 = vshll.u32 %v2517_v8, %v1660_v38  ;;  %vm1678_vm3 = vcmp.lt.s32.totalorder %v1659_v11, 1  ;;  %vm1679_vm4 = vcmp.lt.s32.totalorder %v1659_v11, 2 }
 0x3bd   : > { %v1664_v47 = vshrl.u32 %v2514_v1, %v1661_v40  ;;  %v1667_v27 = vshrl.u32 %v2515_v4, %v1661_v40  ;;  %v1670_v62 = vshrl.u32 %v2516_v6, %v1661_v40  ;;  %v1662_v57 = vshrl.u32 %v2513_v63, %v1661_v40 }
 0x3be   : > { %v1673_v0 = vshrl.u32 %v2517_v8, %v1661_v40  ;;  %v1676_v30 = vshrl.u32 %v2518_v15, %v1661_v40  ;;  %vm1680_vm5 = vcmp.lt.s32.totalorder %v1659_v11, 3  ;;  %v1557_v18 = vsub.s32 32, %v1556_v34 }
 0x3bf   : > { %v1665_v54 = vor.u32 %v1664_v47, %v1663_v3  ;;  %v1668_v2 = vor.u32 %v1667_v27, %v1666_v59  ;;  %v1671_v24 = vor.u32 %v1670_v62, %v1669_v41  ;;  %vm1681_vm6 = vcmp.lt.s32.totalorder %v1659_v11, 4 }
 0x3c0   : > { %v1674_v23 = vor.u32 %v1673_v0, %v1672_v35  ;;  %v1677_v12 = vor.u32 %v1676_v30, %v1675_v61  ;;  %v1559_v19 = vshll.u32 %v2513_v63, %v1556_v34  ;;  %v1562_v50 = vshll.u32 %v2514_v1, %v1556_v34 }
 0x3c1   : > { %v1682_v49 = vsel %vm1678_vm3, %v1662_v57, %v1665_v54  ;;  %v1683_v13 = vsel %vm1681_vm6, %v1671_v24, 2102212464  ;;  %v1686_v14 = vsel %vm1678_vm3, %v1665_v54, %v1668_v2  ;;  %v1690_v55 = vsel %vm1678_vm3, %v1668_v2, %v1671_v24 }
 0x3c2   : > { %v1684_v17 = vsel %vm1680_vm5, %v1668_v2, %v1683_v13  ;;  %v1687_v16 = vsel %vm1681_vm6, %v1674_v23, 920167782  ;;  %v1691_v21 = vsel %vm1681_vm6, %v1677_v12, 1326507024  ;;  %v1558_v22 = vshrl.u32 %v2513_v63, %v1557_v18 }
 0x3c3   : > { %v1688_v29 = vsel %vm1680_vm5, %v1671_v24, %v1687_v16  ;;  %v1692_v56 = vsel %vm1680_vm5, %v1674_v23, %v1691_v21  ;;  %v1560_v7 = vshrl.u32 %v2514_v1, %v1557_v18  ;;  %v1685_v9 = vsel %vm1679_vm4, %v1682_v49, %v1684_v17 }
 0x3c4   : > { %v1689_v5 = vsel %vm1679_vm4, %v1686_v14, %v1688_v29  ;;  %v1693_v10 = vsel %vm1679_vm4, %v1690_v55, %v1692_v56  ;;  %v1563_v46 = vshrl.u32 %v2515_v4, %v1557_v18  ;;  %v1565_v39 = vshll.u32 %v2515_v4, %v1556_v34 }
 0x3c5   : > { %v3360_v28 = vmul.u32.u64.low %v3325_v53, %v1693_v10  ;;  %v3361_v51 = vmul.u32.u64.high %v3325_v53, %v1693_v10, %v3360_v28  ;;  %v3364_v36 = vmul.u32.u64.low %v3325_v53, %v1689_v5  ;;  %v3365_v37 = vmul.u32.u64.high %v3325_v53, %v1689_v5, %v3364_v36 }
 0x3c6   : > { %v1561_v20 = vor.u32 %v1560_v7, %v1559_v19  ;;  %v1564_v38 = vor.u32 %v1563_v46, %v1562_v50  ;;  %v1566_v40 = vshrl.u32 %v2516_v6, %v1557_v18  ;;  %v1701_v3 = vmul.u32 %v3325_v53, %v1685_v9 }
 0x3c7   : > { %v1568_v11 = vshll.u32 %v2516_v6, %v1556_v34  ;;  %v1569_v59 = vshrl.u32 %v2517_v8, %v1557_v18  ;;  %v1572_v41 = vshrl.u32 %v2518_v15, %v1557_v18  ;;  %v1571_v61 = vshll.u32 %v2517_v8, %v1556_v34 }
 0x3c8   : > { %v1567_v35 = vor.u32 %v1566_v40, %v1565_v39  ;;  %vm1574_vm7 = vcmp.lt.s32.totalorder %v3327_v31, 1  ;;  %vm1575_vm8 = vcmp.lt.s32.totalorder %v3327_v31, 2  ;;  %vm1703_vm9 = vc.u32 %v3361_v51, %v3364_v36 }
 0x3c9   : > { %v1704_v47 = vadd.s32 1, %v3365_v37  ;;  %v1570_v27 = vor.u32 %v1569_v59, %v1568_v11  ;;  %vm1576_vm10 = vcmp.lt.s32.totalorder %v3327_v31, 3  ;;  %v1573_v53 = vor.u32 %v1572_v41, %v1571_v61 }
 0x3ca   : > { %vm1577_vm11 = vcmp.lt.s32.totalorder %v3327_v31, 4  ;;  %v1578_v62 = vsel %vm1574_vm7, %v1558_v22, %v1561_v20  ;;  %v1582_v57 = vsel %vm1574_vm7, %v1561_v20, %v1564_v38  ;;  %v1586_v54 = vsel %vm1574_vm7, %v1564_v38, %v1567_v35 }
 0x3cb   : > { %v1705_v0 = vsel %vm1703_vm9, %v1704_v47, %v3365_v37  ;;  %v1579_v30 = vsel %vm1577_vm11, %v1567_v35, 2102212464  ;;  %v1583_v34 = vsel %vm1577_vm11, %v1570_v27, 920167782  ;;  %v1587_v23 = vsel %vm1577_vm11, %v1573_v53, 1326507024 }
 0x3cc   : > { %v1706_v2 = vadd.s32 %v1705_v0, %v1701_v3  ;;  %v1580_v24 = vsel %vm1576_vm10, %v1564_v38, %v1579_v30  ;;  %v1584_v18 = vsel %vm1576_vm10, %v1567_v35, %v1583_v34  ;;  %v1588_v19 = vsel %vm1576_vm10, %v1570_v27, %v1587_v23 }
 0x3cd   : > { %v1585_v12 = vsel %vm1575_vm8, %v1582_v57, %v1584_v18  ;;  %vm1865_vm12 = vcmp.gt.s32.totalorder %v3334_v26, 0  ;;  %v1753_v49 = vand.u32 2139095040, %v3314_v58  ;;  %v1589_v14 = vsel %vm1575_vm8, %v1586_v54, %v1588_v19 }
 0x3ce   : > { %v1707_v13 = vadd.s32 536870912, %v1706_v2  ;;  %v3388_v55 = vmul.u32.u64.low %v3329_v42, %v1585_v12  ;;  %v3389_v17 = vmul.u32.u64.high %v3329_v42, %v1585_v12, %v3388_v55  ;;  %v1581_v16 = vsel %vm1575_vm8, %v1578_v62, %v1580_v24 }
 0x3cf   : > { %v3395_v21 = vmul.u32.u64.low %v3329_v42, %v1589_v14  ;;  %v3396_v50 = vmul.u32.u64.high %v3329_v42, %v1589_v14, %v3395_v21  ;;  %v1866_v29 = vsel %vm1865_vm12, %v3334_v26, 0  ;;  %v3402_v7 = vadd.s32 %v3364_v36, %v3361_v51 }
 0x3d0   : > { %v3399_v56 = vshrl.u32 %v1707_v13, 30  ;;  %v1868_v22 = vand.u32 31, %v1866_v29  ;;  %v3406_v9 = vshll.u32 %v1862_v43, 8  ;;  %v1754_v5 = vshrl.u32 %v1753_v49, 23 }
 0x3d1   : > { %v3410_v31 = vand.u32 8388607, %v1750_v45  ;;  %v1597_v46 = vmul.u32 %v3329_v42, %v1581_v16  ;;  %v1600_v26 = vadd.s32 1, %v3389_v17  ;;  %vm1599_vm13 = vc.u32 %v3396_v50, %v3388_v55 }
 0x3d2   : > { %v1709_v10 = vshll.u32 %v3399_v56, 30  ;;  %v1869_v28 = vsub.s32 32, %v1868_v22  ;;  %v1867_v51 = vshrl.u32 %v1866_v29, 5  ;;  %v1871_v32 = vshll.u32 %v2513_v63, %v1868_v22 }
 0x3d3   : > { %v1874_v43 = vshll.u32 %v2514_v1, %v1868_v22  ;;  %v1601_v37 = vsel %vm1599_vm13, %v1600_v26, %v3389_v17  ;;  %v1877_v38 = vshll.u32 %v2515_v4, %v1868_v22  ;;  %v1880_v3 = vshll.u32 %v2516_v6, %v1868_v22 }
 0x3d4   : > { %v3419_v36 = vsub.s32 %v1706_v2, %v1709_v10  ;;  %v1872_v20 = vshrl.u32 %v2514_v1, %v1869_v28  ;;  %v1602_v42 = vadd.s32 %v1601_v37, %v1597_v46  ;;  %v1875_v39 = vshrl.u32 %v2515_v4, %v1869_v28 }
 0x3d5   : > { %v1878_v40 = vshrl.u32 %v2516_v6, %v1869_v28  ;;  %v1881_v41 = vshrl.u32 %v2517_v8, %v1869_v28  ;;  %v1883_v35 = vshll.u32 %v2517_v8, %v1868_v22  ;;  %v1884_v53 = vshrl.u32 %v2518_v15, %v1869_v28 }
 0x3d6   : > { %v1712_v11 = vsub.s32 0, %v3419_v36  ;;  %v1873_v59 = vor.u32 %v1872_v20, %v1871_v32  ;;  %v1603_v61 = vadd.s32 536870912, %v1602_v42  ;;  %v1876_v47 = vor.u32 %v1875_v39, %v1874_v43 }
 0x3d7   : > { %v1879_v27 = vor.u32 %v1878_v40, %v1877_v38  ;;  %v1870_v57 = vshrl.u32 %v2513_v63, %v1869_v28  ;;  %v1882_v0 = vor.u32 %v1881_v41, %v1880_v3  ;;  %v2189_v30 = vadd.s32 4294967169, %v1754_v5 }
 0x3d8   : > { %v2186_v62 = vmin.u32 %v1712_v11, %v3419_v36  ;;  %v3433_v34 = vshrl.u32 %v1603_v61, 30  ;;  %v1885_v54 = vor.u32 %v1884_v53, %v1883_v35  ;;  %vm1886_vm15 = vcmp.lt.s32.totalorder %v1867_v51, 1 }
 0x3d9   : > { %vm1889_vm0 = vcmp.lt.s32.totalorder %v1867_v51, 4  ;;  %vm1887_vm1 = vcmp.lt.s32.totalorder %v1867_v51, 2  ;;  %v1894_v18 = vsel %vm1886_vm15, %v1873_v59, %v1876_v47  ;;  %vm1888_vm2 = vcmp.lt.s32.totalorder %v1867_v51, 3 }
 0x3da   : > { %v1714_v2 = vclz %v2186_v62  ;;  %v1891_v24 = vsel %vm1889_vm0, %v1879_v27, 2102212464  ;;  %v1605_v23 = vshll.u32 %v3433_v34, 30  ;;  %v1895_v12 = vsel %vm1889_vm0, %v1882_v0, 920167782 }
 0x3db   : > { %v1898_v19 = vsel %vm1886_vm15, %v1876_v47, %v1879_v27  ;;  %v1890_v13 = vsel %vm1886_vm15, %v1870_v57, %v1873_v59  ;;  %v1896_v14 = vsel %vm1888_vm2, %v1879_v27, %v1895_v12  ;;  %v1899_v17 = vsel %vm1889_vm0, %v1885_v54, 1326507024 }
 0x3dc   : > { %v2187_v49 = vadd.s32 4294967294, %v1714_v2  ;;  %v3436_v16 = vsub.s32 %v1602_v42, %v1605_v23  ;;  %v1892_v21 = vsel %vm1888_vm2, %v1876_v47, %v1891_v24  ;;  %v1897_v29 = vsel %vm1887_vm1, %v1894_v18, %v1896_v14 }
 0x3dd   : > { %v1900_v22 = vsel %vm1888_vm2, %v1882_v0, %v1899_v17  ;;  %v3441_v10 = vmul.u32.u64.low %v3406_v9, %v1897_v29  ;;  %v3442_v46 = vmul.u32.u64.high %v3406_v9, %v1897_v29, %v3441_v10  ;;  %v1893_v38 = vsel %vm1887_vm1, %v1890_v13, %v1892_v21 }
 0x3de   : > { %vm2188_vm3 = vcmp.lt.s32.totalorder %v2187_v49, 0  ;;  %v1901_v5 = vsel %vm1887_vm1, %v1898_v19, %v1900_v22  ;;  %v1608_v28 = vsub.s32 0, %v3436_v16  ;;  %v1760_v42 = vadd.s32 1, %v2189_v30 }
 0x3df   : > { %v1717_v26 = vsel %vm2188_vm3, 0, %v2187_v49  ;;  %v3447_v32 = vmul.u32.u64.low %v3406_v9, %v1901_v5  ;;  %v3448_v43 = vmul.u32.u64.high %v3406_v9, %v1901_v5, %v3447_v32  ;;  %v1758_v3 = vor.u32 8388608, %v3410_v31 }
 0x3e0   : > { %v1718_v37 = vsub.s32 32, %v1717_v26  ;;  %v1722_v20 = vsub.s32 4294967266, %v1717_v26  ;;  %v1719_v39 = vshll.u32 %v3419_v36, %v1717_v26  ;;  %v2182_v40 = vmin.u32 %v1608_v28, %v3436_v16 }
 0x3e1   : > { %v1912_v41 = vadd.s32 1, %v3442_v46  ;;  %vm1761_vm4 = vcmp.gt.s32.totalorder %v1760_v42, 0  ;;  %v1909_v61 = vmul.u32 %v3406_v9, %v1893_v38  ;;  %vm1911_vm5 = vc.u32 %v3448_v43, %v3441_v10 }
 0x3e2   : > { %v1720_v11 = vshrl.u32 %v3402_v7, %v1718_v37  ;;  %v1723_v59 = vadd.s32 127, %v1722_v20  ;;  %v1610_v35 = vclz %v2182_v40  ;;  %v1762_v51 = vsel %vm1761_vm4, %v1760_v42, 0 }
 0x3e3   : > { %v1598_v36 = vadd.s32 %v3388_v55, %v3396_v50  ;;  %v1913_v31 = vsel %vm1911_vm5, %v1912_v41, %v3442_v46  ;;  %vm1648_vm6 = vcmp.lt.s32.totalorder %v3298_v52, 0  ;;  %v3463_v62 = vshrl.u32 %v1762_v51, 5 }
 0x3e4   : > { %v1721_v47 = vor.u32 %v1720_v11, %v1719_v39  ;;  %v1724_v27 = vshll.u32 %v1723_v59, 23  ;;  %v2183_v7 = vadd.s32 4294967294, %v1610_v35  ;;  %v1914_v53 = vadd.s32 %v1913_v31, %v1909_v61 }
 0x3e5   : > { %v1764_v57 = vand.u32 31, %v1762_v51  ;;  %vm3467_vm7 = vcmp.le.f32.partialorder %v1646_v60, 0.7853982  ;;  %v3471_v30 = vshll.u32 %v1758_v3, 8  ;;  %v1628_v55 = vsub.s32 4, %v3433_v34 }
 0x3e6   : > { %v1725_v0 = vor.u32 4788187, %v1724_v27  ;;  %v1732_v50 = vsub.s32 4, %v3399_v56  ;;  %v1728_v54 = vcvt.s32.f32 %v1721_v47  ;;  %vm2184_vm8 = vcmp.lt.s32.totalorder %v2183_v7, 0 }
 0x3e7   : > { %v1915_v2 = vadd.s32 536870912, %v1914_v53  ;;  %v1765_v24 = vsub.s32 32, %v1764_v57  ;;  %v1613_v23 = vsel %vm2184_vm8, 0, %v2183_v7  ;;  %v1767_v12 = vshll.u32 %v2513_v63, %v1764_v57 }
 0x3e8   : > { %v1726_v18 = vand.u32 2147483647, %v1725_v0  ;;  %v1770_v60 = vshll.u32 %v2514_v1, %v1764_v57  ;;  %v1614_v19 = vsub.s32 32, %v1613_v23  ;;  %v1618_v49 = vsub.s32 4294967266, %v1613_v23 }
 0x3e9   : > { %v3477_v13 = vshrl.u32 %v1915_v2, 30  ;;  %v1773_v14 = vshll.u32 %v2515_v4, %v1764_v57  ;;  %vm1782_vm9 = vcmp.lt.s32.totalorder %v3463_v62, 1  ;;  %v1615_v21 = vshll.u32 %v3436_v16, %v1613_v23 }
 0x3ea   : > { %v1729_v17 = vmul.f32 %v1728_v54, %v1726_v18  ;;  %v1768_v29 = vshrl.u32 %v2514_v1, %v1765_v24  ;;  %v1771_v22 = vshrl.u32 %v2515_v4, %v1765_v24  ;;  %v1616_v5 = vshrl.u32 %v1598_v36, %v1614_v19 }
 0x3eb   : > { %v1619_v46 = vadd.s32 127, %v1618_v49  ;;  %v1917_v26 = vshll.u32 %v3477_v13, 30  ;;  %v1774_v28 = vshrl.u32 %v2516_v6, %v1765_v24  ;;  %v1776_v38 = vshll.u32 %v2516_v6, %v1764_v57 }
 0x3ec   : > { %v1730_v32 = vxor.u32 2147483648, %v1729_v17  ;;  %v1769_v37 = vor.u32 %v1768_v29, %v1767_v12  ;;  %v1772_v20 = vor.u32 %v1771_v22, %v1770_v60  ;;  %vm1544_vm10 = vcmp.lt.s32.totalorder %v3300_v48, 0 }
 0x3ed   : > { %v1617_v42 = vor.u32 %v1616_v5, %v1615_v21  ;;  %v1620_v39 = vshll.u32 %v1619_v46, 23  ;;  %v3488_v16 = vsub.s32 %v1914_v53, %v1917_v26  ;;  %v1775_v1 = vor.u32 %v1774_v28, %v1773_v14 }
 0x3ee   : > { %v1731_v4 = vsel %vm1648_vm6, %v1730_v32, %v1729_v17  ;;  %v1777_v40 = vshrl.u32 %v2517_v8, %v1765_v24  ;;  %v1779_v3 = vshll.u32 %v2517_v8, %v1764_v57  ;;  %v1780_v11 = vshrl.u32 %v2518_v15, %v1765_v24 }
 0x3ef   : > { %v1734_v6 = vsel %vm3467_vm7, %v3298_v52, %v1731_v4  ;;  %vm3500_vm11 = vcmp.le.f32.partialorder %v1542_v33, 0.7853982  ;;  %v1621_v41 = vor.u32 4788187, %v1620_v39  ;;  %v1920_v35 = vsub.s32 0, %v3488_v16 }
 0x3f0   : > { %v1766_v61 = vshrl.u32 %v2513_v63, %v1765_v24  ;;  %2432 = vcosq.f32 %v1734_v6  ;;  %v1624_v51 = vcvt.s32.f32 %v1617_v42  ;;  %v1778_v8 = vor.u32 %v1777_v40, %v1776_v38 }
 0x3f1   : > { %v1781_v47 = vor.u32 %v1780_v11, %v1779_v3  ;;  %2434 = vsinq.f32 %v1734_v6  ;;  %v1622_v15 = vand.u32 2147483647, %v1621_v41  ;;  %v2194_v27 = vmin.u32 %v1920_v35, %v3488_v16 }
 0x3f2   : > { %vm1785_vm12 = vcmp.lt.s32.totalorder %v3463_v62, 4  ;;  %vm1784_vm13 = vcmp.lt.s32.totalorder %v3463_v62, 3  ;;  %v1790_v36 = vsel %vm1782_vm9, %v1769_v37, %v1772_v20  ;;  %vm1783_vm15 = vcmp.lt.s32.totalorder %v3463_v62, 2 }
 0x3f3   : > { %v1787_v33 = vsel %vm1785_vm12, %v1775_v1, 2102212464  ;;  %v1791_v31 = vsel %vm1785_vm12, %v1778_v8, 920167782  ;;  %v1625_v7 = vmul.f32 %v1624_v51, %v1622_v15  ;;  %v1922_v53 = vclz %v2194_v27 }
 0x3f4   : > { %v1792_v63 = vsel %vm1784_vm13, %v1775_v1, %v1791_v31  ;;  %v1786_v57 = vsel %vm1782_vm9, %v1766_v61, %v1769_v37  ;;  %v1794_v54 = vsel %vm1782_vm9, %v1772_v20, %v1775_v1  ;;  %v1795_v2 = vsel %vm1785_vm12, %v1781_v47, 1326507024 }
 0x3f5   : > { %v1793_v0 = vsel %vm1783_vm15, %v1790_v36, %v1792_v63  ;;  %v1626_v24 = vxor.u32 2147483648, %v1625_v7  ;;  %v2195_v18 = vadd.s32 4294967294, %v1922_v53  ;;  %v1788_v23 = vsel %vm1784_vm13, %v1772_v20, %v1787_v33 }
 0x3f6   : > { %v1796_v12 = vsel %vm1784_vm13, %v1778_v8, %v1795_v2  ;;  %v3521_v19 = vmul.u32.u64.low %v3471_v30, %v1793_v0  ;;  %v3522_v49 = vmul.u32.u64.high %v3471_v30, %v1793_v0, %v3521_v19  ;;  %v1629_v14 = vsel %vm1544_vm10, %v1628_v55, %v3433_v34 }
 0x3f7   : > { %v1797_v60 = vsel %vm1783_vm15, %v1794_v54, %v1796_v12  ;;  %v1627_v17 = vsel %vm1544_vm10, %v1626_v24, %v1625_v7  ;;  %vm2196_vm0 = vcmp.lt.s32.totalorder %v2195_v18, 0  ;;  %v1789_v46 = vsel %vm1783_vm15, %v1786_v57, %v1788_v23 }
 0x3f8   : > { %v3533_v21 = vmul.u32.u64.low %v3471_v30, %v1797_v60  ;;  %v3534_v29 = vmul.u32.u64.high %v3471_v30, %v1797_v60, %v3533_v21  ;;  %v1630_v22 = vsel %vm3500_vm11, %v3300_v48, %v1627_v17  ;;  %v1925_v5 = vsel %vm2196_vm0, 0, %v2195_v18 }
 0x3f9   : > { %v1733_v34 = vsel %vm1648_vm6, %v1732_v50, %v3399_v56  ;;  %2436 = vcosq.f32 %v1630_v22  ;;  %v1930_v55 = vsub.s32 4294967266, %v1925_v5  ;;  %v1631_v26 = vsel %vm3500_vm11, 0, %v1629_v14 }
 0x3fa   : > { %v2433_v28 = vpop.eup %2432  ;;  %2438 = vsinq.f32 %v1630_v22  ;;  %v1808_v32 = vadd.s32 1, %v3522_v49  ;;  %v1735_v37 = vsel %vm3467_vm7, 0, %v1733_v34  ;;  %v1926_v20 = vsub.s32 32, %v1925_v5 }
 0x3fb   : > { %v2435_v62 = vpop.eup %2434  ;;  %v1931_v38 = vadd.s32 127, %v1930_v55  ;;  %v1805_v42 = vmul.u32 %v3471_v30, %v1789_v46  ;;  %vm1807_vm1 = vc.u32 %v3534_v29, %v3521_v19  ;;  %v1635_v50 = vadd.s32 3, %v1631_v26 }
 0x3fc   : > { %v1809_v56 = vsel %vm1807_vm1, %v1808_v32, %v3522_v49  ;;  %v1910_v39 = vadd.s32 %v3441_v10, %v3448_v43  ;;  %v1739_v40 = vadd.s32 3, %v1735_v37  ;;  %v1743_v3 = vxor.u32 2147483648, %v2435_v62 }
 0x3fd   : > { %v1932_v1 = vshll.u32 %v1931_v38, 23  ;;  %v1810_v4 = vadd.s32 %v1809_v56, %v1805_v42  ;;  %v1746_v59 = vxor.u32 2147483648, %v2433_v28  ;;  %v1636_v41 = vand.u32 3, %v1635_v50 }
 0x3fe   : > { %v1928_v9 = vshrl.u32 %v1910_v39, %v1926_v20  ;;  %v1740_v6 = vand.u32 3, %v1739_v40  ;;  %v1927_v30 = vshll.u32 %v3488_v16, %v1925_v5  ;;  %vm1738_vm6 = vweird.f32 %v3298_v52 }
 0x3ff   : > { %v1811_v11 = vadd.s32 536870912, %v1810_v4  ;;  %v1933_v35 = vor.u32 4788187, %v1932_v1  ;;  %vm1641_vm5 = vcmp.eq.s32.totalorder %v1636_v41, 2  ;;  %vm1638_vm7 = vcmp.eq.s32.totalorder %v1636_v41, 0 }
 0x400   : > { %vm1742_vm2 = vcmp.eq.s32.totalorder %v1740_v6, 0  ;;  %vm1745_vm3 = vcmp.eq.s32.totalorder %v1740_v6, 2  ;;  %v1929_v47 = vor.u32 %v1928_v9, %v1927_v30  ;;  %vm1741_vm4 = vcmp.lt.s32.totalorder %v1740_v6, 2 }
 0x401   : > { %v3558_v61 = vshrl.u32 %v1811_v11, 30  ;;  %v1744_v51 = vsel %vm1742_vm2, %v2433_v28, %v1743_v3  ;;  %v1747_v43 = vsel %vm1745_vm3, %v1746_v59, %v2435_v62  ;;  %v1934_v36 = vand.u32 2147483647, %v1933_v35 }
 0x402   : > { %v1748_v33 = vsel %vm1741_vm4, %v1744_v51, %v1747_v43  ;;  %v1936_v63 = vcvt.s32.f32 %v1929_v47  ;;  %vm1637_vm8 = vcmp.lt.s32.totalorder %v1636_v41, 2  ;;  %vm1634_vm9 = vweird.f32 %v3300_v48 }
 0x403   : > { %v2437_v8 = vpop.eup %2436  ;;  %v1813_v10 = vshll.u32 %v3558_v61, 30  ;;  %v1749_v7 = vsel %vm1738_vm6, nan, %v1748_v33  ;;  %vm1856_vm11 = vcmp.lt.s32.totalorder %v3308_v44, 0  ;;  %v1806_v48 = vadd.s32 %v3521_v19, %v3534_v29 }
 0x404   : > { %v2439_v15 = vpop.eup %2438  ;;  %v1642_v27 = vxor.u32 2147483648, %v2437_v8  ;;  %v1937_v2 = vmul.f32 %v1936_v63, %v1934_v36  ;;  %vm3570_vm12 = vcmp.le.f32.partialorder %v1854_v25, 0.7853982  ;;  %v1940_v32 = vsub.s32 4, %v3477_v13  ;;  %v1959_v36 = vld [vmem:[%s3652_s7 + $0x8] sm:$0xff] }
 0x405   : > { %v1814_v16 = vsub.s32 %v1810_v4, %v1813_v10  ;;  %v1639_v31 = vxor.u32 2147483648, %v2439_v15  ;;  %v1836_v20 = vsub.s32 4, %v3558_v61  ;;  %vm1752_vm13 = vcmp.lt.s32.totalorder %v3314_v58, 0 }
 0x406   : > { %v1643_v53 = vsel %vm1641_vm5, %v1642_v27, %v2439_v15  ;;  %v1938_v52 = vxor.u32 2147483648, %v1937_v2  ;;  %v1941_v25 = vsel %vm1856_vm11, %v1940_v32, %v3477_v13  ;;  %vm1751_vm15 = vcmp.le.f32.partialorder %v1750_v45, 0.7853982 }
 0x407   : > { %v1816_v57 = vsub.s32 0, %v1814_v16  ;;  %v1640_v0 = vsel %vm1638_vm7, %v2437_v8, %v1639_v31  ;;  %v1943_v42 = vsel %vm3570_vm12, 0, %v1941_v25  ;;  %v1837_v50 = vsel %vm1752_vm13, %v1836_v20, %v3558_v61 }
 0x408   : > { %v1644_v54 = vsel %vm1637_vm8, %v1640_v0, %v1643_v53  ;;  %v1939_v14 = vsel %vm1856_vm11, %v1938_v52, %v1937_v2  ;;  %v1947_v1 = vadd.s32 3, %v1943_v42  ;;  %v1839_v40 = vsel %vm1751_vm15, 0, %v1837_v50 }
 0x409   : > { %v2190_v24 = vmin.u32 %v1816_v57, %v1814_v16  ;;  %v1645_v18 = vsel %vm1634_vm9, nan, %v1644_v54  ;;  %v1942_v55 = vsel %vm3570_vm12, %v3308_v44, %v1939_v14  ;;  %v1843_v9 = vadd.s32 3, %v1839_v40 }
 0x40a   : > { %v2293_v23 = vpack.c.bf16 %v1749_v7, %v1645_v18  ;;  %2440 = vcosq.f32 %v1942_v55  ;;  %v1948_v3 = vand.u32 3, %v1947_v1  ;;  %vm1946_vm5 = vweird.f32 %v3308_v44  ;;  %v1970_v44 = vpop.permute.xlu1 %1969 }
 0x40b   : > { %v1818_v12 = vclz %v2190_v24  ;;  %2442 = vsinq.f32 %v1942_v55  ;;  %v1844_v59 = vand.u32 3, %v1843_v9  ;;  %vm1842_vm7 = vweird.f32 %v3314_v58 }
 0x40c   : > { %2294 = vmatprep.subr.bf16.mxu1 %v2293_v23  ;;  %vm1950_vm0 = vcmp.eq.s32.totalorder %v1948_v3, 0  ;;  %vm1953_vm1 = vcmp.eq.s32.totalorder %v1948_v3, 2  ;;  %vm1949_vm2 = vcmp.lt.s32.totalorder %v1948_v3, 2 }
 0x40d   : > { %v2191_v60 = vadd.s32 4294967294, %v1818_v12  ;;  %2296 = vmatpush3.bf16.msra.mxu1 %v2293_v23  ;;  %vm1849_vm3 = vcmp.eq.s32.totalorder %v1844_v59, 2  ;;  %vm1846_vm4 = vcmp.eq.s32.totalorder %v1844_v59, 0  ;;  %vm1845_vm6 = vcmp.lt.s32.totalorder %v1844_v59, 2 }
 0x40f   : > { %vm2192_vm10 = vcmp.lt.s32.totalorder %v2191_v60, 0 }
 0x410   : > { %v1821_v49 = vsel %vm2192_vm10, 0, %v2191_v60 }
 0x411   : > { %v1822_v17 = vsub.s32 32, %v1821_v49  ;;  %v1826_v21 = vsub.s32 4294967266, %v1821_v49  ;;  %v1823_v5 = vshll.u32 %v1814_v16, %v1821_v49 }
 0x413   : > { %v1824_v46 = vshrl.u32 %v1806_v48, %v1822_v17  ;;  %v1827_v34 = vadd.s32 127, %v1826_v21 }
 0x414   : > { %v2441_v4 = vpop.eup %2440 }
 0x415   : > { %v1825_v26 = vor.u32 %v1824_v46, %v1823_v5  ;;  %v1828_v28 = vshll.u32 %v1827_v34, 23  ;;  %v2443_v13 = vpop.eup %2442  ;;  %v1954_v6 = vxor.u32 2147483648, %v2441_v4 }
 0x416   : > { %v1951_v11 = vxor.u32 2147483648, %v2443_v13 }
 0x417   : > { %v1829_v19 = vor.u32 4788187, %v1828_v28  ;;  %v1832_v37 = vcvt.s32.f32 %v1825_v26  ;;  %v1955_v45 = vsel %vm1953_vm1, %v1954_v6, %v2443_v13 }
 0x418   : > { %v1952_v41 = vsel %vm1950_vm0, %v2441_v4, %v1951_v11 }
 0x419   : > { %v1830_v29 = vand.u32 2147483647, %v1829_v19  ;;  %v1956_v51 = vsel %vm1949_vm2, %v1952_v41, %v1955_v45 }
 0x41a   : > { %v1957_v43 = vsel %vm1946_vm5, nan, %v1956_v51 }
 0x41b   : > { %v1833_v62 = vmul.f32 %v1832_v37, %v1830_v29 }
 0x41d   : > { %v1834_v38 = vxor.u32 2147483648, %v1833_v62 }
 0x41f   : > { %v1835_v56 = vsel %vm1752_vm13, %v1834_v38, %v1833_v62 }
 0x420   : > { %v1838_v39 = vsel %vm1751_vm15, %v3314_v58, %v1835_v56  ;;  %v1965_v58 = vpop.permute.xlu0 %1964 }
 0x421   : > { %2444 = vcosq.f32 %v1838_v39 }
 0x422   : > { %2446 = vsinq.f32 %v1838_v39 }
 0x42b   : > { %v2445_v30 = vpop.eup %2444 }
 0x42c   : > { %v2447_v35 = vpop.eup %2446  ;;  %v1850_v61 = vxor.u32 2147483648, %v2445_v30 }
 0x42d   : > { %v1847_v8 = vxor.u32 2147483648, %v2447_v35 }
 0x42e   : > { %v1851_v47 = vsel %vm1849_vm3, %v1850_v61, %v2447_v35 }
 0x42f   : > { %v1848_v10 = vsel %vm1846_vm4, %v2445_v30, %v1847_v8 }
 0x430   : > { %v1852_v15 = vsel %vm1845_vm6, %v1848_v10, %v1851_v47 }
 0x431   : > { %v1853_v27 = vsel %vm1842_vm7, nan, %v1852_v15 }
 0x432   : > { %v2297_v33 = vpack.c.bf16 %v1957_v43, %v1853_v27 }
 0x434   : > { %2298 = vmatprep.subr.bf16.mxu1 %v2297_v33 }
 0x435   : > { %2300 = vmatpush3.bf16.msra.mxu1 %v2297_v33 }
 0x438   : > { %2275 = vmatmul.mubr.msk.f32.vlgmr.msra.gmra.mrb[4].mxu1 %vm903_vm14, %v1959_v36 }
 0x50b   : > { %v2276_v16 = vpop.f32.mrb[4].mxu1 }
 0x50c   : > { %v2050_v31 = vadd.f32 %v2276_v16, %v1970_v44  ;;  %v2044_v7 = vpop.f32.mrb[5].mxu1 }
 0x50d   : > { %v2045_v53 = vadd.f32 %v2044_v7, %v1965_v58 }
 0x50e   : > { %2054 = vst [vmem:[%s323_s24 + $0x8] sm:$0xff] %v2050_v31 }
 0x50f   : > { %2053 = vst [vmem:[%s323_s24] sm:$0xff] %v2045_v53 }
 0x510   : > { %2461 = shalt.err (!%p2458_p3)
}
 0x511   : > { %s2462_s22 = scalar_lea.hbm %s3602_s14, 256  ;;  %s2466_s26 = scalar_lea.hbm %s3654_s9, 512 }
 0x512   : > { %p2463_p4 = scmp.ne.s32.totalorder %s3602_s14, %s2462_s22  ;;  %p2467_p9 = scmp.lt.u32.totalorder %s3602_s14, %s3654_s9 }
 0x513   : > { %p2468_p10 = scmp.lt.u32.totalorder %s2466_s26, %s2462_s22  ;;  %p2470_p12 = scmp.lt.u32.totalorder %s2462_s22, %s3602_s14 }
 0x514   : > { %p2464_p7 = pnand %p2463_p4, %p2611_p5 }
 0x515   : > { %p2469_p11 = por %p2468_p10, %p2467_p9 }
 0x516   : > { %p2465_p8 = pneg %p2464_p7 }
 0x517   : > { %p2471_p13 = por %p2470_p12, %p2469_p11 }
 0x519   : > { %p2472_p0 = pnand %p2471_p13, %p2465_p8 }
 0x51b   : > { %2475 = shalt.err (!%p2472_p0)
}
 0x51c   : > { %s2520_s13 = smov 128   ;;  %s2521_s16 = smov 256  }
 0x51d   : > { %s2522_s17 = smov 8  }
 0x51e   : > { %2349 = dma.vmem_to_hbm [thread:$0]  (%p2611_p5), %s3597_s25, 256, %s3602_s14, %s3604_s28, %s2520_s13, %s2521_s16, %s2522_s17  }
 0x51f PF: > { %p2355_p1 = scmp.ge.s32.totalorder %s2510_s12, 2  ;;  %s2083_s21 = sand.u32 1, %s2498_s30  }
 0x520   : > { %s2084_s22 = scalar_lea.sflag [#allocation3], %s2083_s21 }
 0x521   : > { %p2352_p2 = pnand %p2355_p1, %p2615_p6 }
 0x523   : > { %2493 = dma.done.wait (!%p2352_p2), %s2084_s22, 256  }
 0x524   : > { %2495 = vsyncadd (!%p2352_p2), %s2084_s22, 4294967040  ;;  %p19_p3 = scmp.ge.s32.totalorder %s2598_s15, 4   ;;  %s3675_s30 = smov %s2502_s10 }
 0x525   : > { %s3676_s10 = smov %s2506_s11  ;;  %s3677_s11 = smov %s2609_s18 }
 0x526   : > { %s3678_s12 = smov %s2598_s15  ;;  %21 = sbr.rel (!%p19_p3) target bundleno = 3 (0x3), region = 91 }
 0x52d   :  { %2089 = vsyncpa [#allocation3], 1 }
 0x52e   :  { %2091 = vsyncpa [#allocation3 + $0x1], 1 }

</bundles_post_ra>
